<compile_context>
chip_gen: v7x
topology: tpu7x:2x2x1
jax: 0.10.0
libtpu: 0.0.40
codegen_flags: <defaults>
</compile_context>

<pallas_src>
import math

import jax
import jax.numpy as jnp
from jax.experimental import pallas as pl
from jax.experimental.pallas import tpu as pltpu

# ----------------------------- model config ---------------------------------
B = 2         # batch
S = 8         # sequence length
D = 32        # input_dim / d_model
NHEAD = 4     # attention heads (D % NHEAD == 0)
F = 64        # dim_feedforward (small stand-in for 1024)
H = 64        # hidden_dim of the regression head (fc: D -> H, fc_final: H -> 1)
HD = D // NHEAD
LN_EPS = 1e-5

# ------------------------- packed-parameter layout ---------------------------
WCOLS = 128                       # lane width of both packed blobs
# weight blob: row offsets (all multiples of 8 -> clean sublane slices)
R_WQKV = 0                        # (D, 3D)   fused q/k/v projection
R_WO   = R_WQKV + D               # (D, D)    output proj, sliced per head
R_W1   = R_WO + D                 # (D, F)    FFN in
R_W2   = R_W1 + D                 # (F, D)    FFN out
R_WFC  = R_W2 + F                 # (D, H)    head fc
R_WFIN = R_WFC + D                # (H, 1) zero-padded to (H, 128)  head fc_final
WROWS  = R_WFIN + H               # = 256
# vector blob: one (zero-padded) row per bias / LN parameter
V_BQKV, V_BO, V_LN1G, V_LN1B, V_B1, V_B2, V_LN2G, V_LN2B, V_BFC, V_BFIN = range(10)
VROWS = 16


def _layer_norm(v, g, b):
    mu = jnp.mean(v, axis=-1, keepdims=True)
    var = jnp.mean((v - mu) ** 2, axis=-1, keepdims=True)
    return (v - mu) * jax.lax.rsqrt(var + LN_EPS) * g + b


# --------------------------------- kernel ------------------------------------
def transformer_regressor_kernel(x_ref, w_ref, v_ref, out_ref):
    X = x_ref[...]                                             # (B*S, D)

    # biases / LN params (each a zero-padded row of the vector blob)
    bqkv = v_ref[V_BQKV:V_BQKV + 1, 0:3 * D]                   # (1, 3D)
    bo   = v_ref[V_BO:V_BO + 1, 0:D]
    ln1g = v_ref[V_LN1G:V_LN1G + 1, 0:D]
    ln1b = v_ref[V_LN1B:V_LN1B + 1, 0:D]
    b1   = v_ref[V_B1:V_B1 + 1, 0:F]
    b2   = v_ref[V_B2:V_B2 + 1, 0:D]
    ln2g = v_ref[V_LN2G:V_LN2G + 1, 0:D]
    ln2b = v_ref[V_LN2B:V_LN2B + 1, 0:D]
    bfc  = v_ref[V_BFC:V_BFC + 1, 0:H]
    bfin = v_ref[V_BFIN:V_BFIN + 1, :]                         # (1, 128), col 0 real

    # weight matrices (row-stacked in the weight blob)
    wqkv = w_ref[R_WQKV:R_WQKV + D, 0:3 * D]                   # (D, 3D)
    w1   = w_ref[R_W1:R_W1 + D, 0:F]
    w2   = w_ref[R_W2:R_W2 + F, 0:D]
    wfc  = w_ref[R_WFC:R_WFC + D, 0:H]
    wfin = w_ref[R_WFIN:R_WFIN + H, :]                         # (H, 128), col 0 real

    # ---- fused QKV projection over the whole (B*S, D) slab ------------------
    qkv = jnp.dot(X, wqkv, preferred_element_type=jnp.float32) + bqkv   # (B*S, 3D)

    # ---- multi-head self-attention (per-batch, heads folded through Wo) -----
    scale = 1.0 / math.sqrt(HD)
    attn_rows = []
    for b in range(B):                                         # B=2, unrolled
        rows = slice(b * S, (b + 1) * S)
        acc = jnp.zeros((S, D), jnp.float32)
        for h in range(NHEAD):
            qh = qkv[rows, h * HD:(h + 1) * HD]                # (S, HD)
            kh = qkv[rows, D + h * HD:D + (h + 1) * HD]        # (S, HD)
            vh = qkv[rows, 2 * D + h * HD:2 * D + (h + 1) * HD]
            s = jax.lax.dot_general(qh, kh, (((1,), (1,)), ((), ())),
                                    preferred_element_type=jnp.float32) * scale
            s = s - jnp.max(s, axis=-1, keepdims=True)
            p = jnp.exp(s)
            p = p * pl.reciprocal(jnp.sum(p, axis=-1, keepdims=True), approx=True)
            ctx = jnp.dot(p, vh, preferred_element_type=jnp.float32)    # (S, HD)
            wo_h = w_ref[R_WO + h * HD:R_WO + (h + 1) * HD, 0:D]        # (HD, D)
            acc = acc + jnp.dot(ctx, wo_h, preferred_element_type=jnp.float32)
        attn_rows.append(acc)
    attn = jnp.concatenate(attn_rows, axis=0) + bo             # (B*S, D)

    # dropout1 (identity in eval)
    x1 = _layer_norm(X + attn, ln1g, ln1b)                     # (B*S, D)

    # ---- feed-forward --------------------------------------------------------
    ff = jnp.dot(x1, w1, preferred_element_type=jnp.float32) + b1
    ff = jnp.maximum(ff, 0.0)
    # dropout inside FFN (identity in eval)
    ff = jnp.dot(ff, w2, preferred_element_type=jnp.float32) + b2
    # dropout2 (identity in eval)
    x2 = _layer_norm(x1 + ff, ln2g, ln2b)                      # (B*S, D)

    # ---- regression head on last token of each sequence ----------------------
    last = jnp.concatenate(
        [x2[b * S + S - 1:b * S + S, :] for b in range(B)], axis=0)     # (B, D)
    hdn = jnp.maximum(jnp.dot(last, wfc, preferred_element_type=jnp.float32) + bfc, 0.0)
    # self.dropout (identity in eval)
    y = jnp.dot(hdn, wfin, preferred_element_type=jnp.float32) + bfin   # (B, 128)
    out_ref[...] = y                                           # col 0 is the result


# ------------------------------ wrapper ---------------------------------------
def _pack_params(params):
    (wq, bq, wk, bk, wv, bv, wo, bo,
     ln1_g, ln1_b, w1, b1, w2, b2, ln2_g, ln2_b,
     wfc, bfc, wfin, bfin) = params

    def pad_mat(m):
        r, c = m.shape
        return jnp.pad(m, ((0, 0), (0, WCOLS - c)))

    wqkv = jnp.concatenate([wq, wk, wv], axis=1)               # (D, 3D)
    wblob = jnp.concatenate(
        [pad_mat(wqkv), pad_mat(wo), pad_mat(w1),
         pad_mat(w2), pad_mat(wfc), pad_mat(wfin)], axis=0)    # (WROWS, 128)

    def pad_vec(v):
        return jnp.pad(v, ((0, 0), (0, WCOLS - v.shape[1])))

    bqkv = jnp.concatenate([bq, bk, bv], axis=1)               # (1, 3D)
    vblob = jnp.concatenate(
        [pad_vec(bqkv), pad_vec(bo),
         pad_vec(ln1_g), pad_vec(ln1_b),
         pad_vec(b1), pad_vec(b2),
         pad_vec(ln2_g), pad_vec(ln2_b),
         pad_vec(bfc), pad_vec(bfin),
         jnp.zeros((VROWS - 10, WCOLS), jnp.float32)], axis=0)  # (VROWS, 128)
    return wblob, vblob


@jax.jit
def transformer_regressor(x, params):
    wblob, vblob = _pack_params(params)
    x2d = x.reshape(B * S, D)

    out = pl.pallas_call(
        transformer_regressor_kernel,
        out_shape=jax.ShapeDtypeStruct((B, WCOLS), jnp.float32),
        grid_spec=pltpu.PrefetchScalarGridSpec(
            num_scalar_prefetch=0,
            grid=(1,),                                  # single invocation: batch folded
            in_specs=[pl.BlockSpec((B * S, D), lambda i: (0, 0)),
                      pl.BlockSpec((WROWS, WCOLS), lambda i: (0, 0)),
                      pl.BlockSpec((VROWS, WCOLS), lambda i: (0, 0))],
            out_specs=pl.BlockSpec((B, WCOLS), lambda i: (0, 0)),
        ),
        compiler_params=pltpu.CompilerParams(
            dimension_semantics=("arbitrary",),
        ),
    )(x2d, wblob, vblob)
    return out[:, :1]                                   # (B, 1)


# ------------------------- pure-JAX reference --------------------------------
def reference(x, params):
    (wq, bq, wk, bk, wv, bv, wo, bo,
     ln1_g, ln1_b, w1, b1, w2, b2, ln2_g, ln2_b,
     wfc, bfc, wfin, bfin) = params

    def ln(v, g, b):
        mu = jnp.mean(v, axis=-1, keepdims=True)
        var = jnp.mean((v - mu) ** 2, axis=-1, keepdims=True)
        return (v - mu) / jnp.sqrt(var + LN_EPS) * g + b

    q = x @ wq + bq
    k = x @ wk + bk
    v = x @ wv + bv
    qh = q.reshape(B, S, NHEAD, HD).transpose(0, 2, 1, 3)
    kh = k.reshape(B, S, NHEAD, HD).transpose(0, 2, 1, 3)
    vh = v.reshape(B, S, NHEAD, HD).transpose(0, 2, 1, 3)
    s = jnp.einsum("bhqd,bhkd->bhqk", qh, kh) / math.sqrt(HD)
    p = jax.nn.softmax(s, axis=-1)
    a = jnp.einsum("bhqk,bhkd->bhqd", p, vh).transpose(0, 2, 1, 3).reshape(B, S, D)
    a = a @ wo + bo
    x1 = ln(x + a, ln1_g, ln1_b)
    ff = jnp.maximum(x1 @ w1 + b1, 0.0) @ w2 + b2
    x2 = ln(x1 + ff, ln2_g, ln2_b)
    last = x2[:, -1, :]
    h = jnp.maximum(last @ wfc + bfc, 0.0)
    return h @ wfin + bfin


def init_params(key):
    ks = jax.random.split(key, 20)

    def w(k, shape, fan_in):
        return jax.random.normal(k, shape, jnp.float32) / math.sqrt(fan_in)

    params = (
        w(ks[0], (D, D), D), jnp.zeros((1, D), jnp.float32),    # Wq, bq
        w(ks[1], (D, D), D), jnp.zeros((1, D), jnp.float32),    # Wk, bk
        w(ks[2], (D, D), D), jnp.zeros((1, D), jnp.float32),    # Wv, bv
        w(ks[3], (D, D), D), w(ks[4], (1, D), D),               # Wo, bo
        jnp.ones((1, D), jnp.float32), jnp.zeros((1, D), jnp.float32),  # ln1 gamma/beta
        w(ks[5], (D, F), D), w(ks[6], (1, F), D),               # W1, b1
        w(ks[7], (F, D), F), w(ks[8], (1, D), F),               # W2, b2
        jnp.ones((1, D), jnp.float32), jnp.zeros((1, D), jnp.float32),  # ln2 gamma/beta
        w(ks[9], (D, H), D), w(ks[10], (1, H), D),              # Wfc, bfc
        w(ks[11], (H, 1), H), w(ks[12], (1, 1), H),             # Wfinal, bfinal
    )
    return params


if __name__ == "__main__":
    key = jax.random.PRNGKey(0)
    kx, kp = jax.random.split(key)
    x = jax.random.normal(kx, (B, S, D), jnp.float32)
    params = init_params(kp)

    out = transformer_regressor(x, params)
    out = jax.block_until_ready(out)
    assert out.shape == (B, 1)

    ref = reference(x, params)
    # tolerance slightly looser than before because softmax uses the EUP
    # approximate reciprocal (pl.reciprocal(..., approx=True)).
    assert jnp.allclose(out, ref, atol=2e-3, rtol=2e-3), (out, ref)

    print("KERNEL_OK")
</pallas_src>

<mosaic_0001>
module attributes {stable_mosaic.version = 11 : i64} {
  func.func @transformer_regressor_kernel(%arg0: i32, %arg1: memref<16x32xf32, #tpu.memory_space<vmem>>, %arg2: memref<256x128xf32, #tpu.memory_space<vmem>>, %arg3: memref<16x128xf32, #tpu.memory_space<vmem>>, %arg4: memref<2x128xf32, #tpu.memory_space<vmem>>) attributes {dimension_semantics = [#tpu.dimension_semantics<arbitrary>], iteration_bounds = array<i64: 1>, scalar_prefetch = 0 : i64, scratch_operands = 0 : i64, tpu.core_type = #tpu.core_type<tc>, window_params = [{pipeline_mode = #tpu.pipeline_mode<synchronous>, transform_indices = @transform_0, window_bounds = array<i64: 16, 32>}, {pipeline_mode = #tpu.pipeline_mode<synchronous>, transform_indices = @transform_1, window_bounds = array<i64: 256, 128>}, {pipeline_mode = #tpu.pipeline_mode<synchronous>, transform_indices = @transform_2, window_bounds = array<i64: 16, 128>}, {pipeline_mode = #tpu.pipeline_mode<synchronous>, transform_indices = @transform_3, window_bounds = array<i64: 2, 128>}]} {
    %c0 = arith.constant 0 : index
    %c0_0 = arith.constant 0 : index
    %0 = vector.load %arg1[%c0, %c0_0] : memref<16x32xf32, #tpu.memory_space<vmem>>, vector<16x32xf32>
    %c0_1 = arith.constant 0 : index
    %c0_2 = arith.constant 0 : index
    %1 = vector.load %arg3[%c0_1, %c0_2] : memref<16x128xf32, #tpu.memory_space<vmem>>, vector<1x96xf32>
    %c1 = arith.constant 1 : index
    %c0_3 = arith.constant 0 : index
    %2 = vector.load %arg3[%c1, %c0_3] : memref<16x128xf32, #tpu.memory_space<vmem>>, vector<1x32xf32>
    %c2 = arith.constant 2 : index
    %c0_4 = arith.constant 0 : index
    %3 = vector.load %arg3[%c2, %c0_4] : memref<16x128xf32, #tpu.memory_space<vmem>>, vector<1x32xf32>
    %c3 = arith.constant 3 : index
    %c0_5 = arith.constant 0 : index
    %4 = vector.load %arg3[%c3, %c0_5] : memref<16x128xf32, #tpu.memory_space<vmem>>, vector<1x32xf32>
    %c4 = arith.constant 4 : index
    %c0_6 = arith.constant 0 : index
    %5 = vector.load %arg3[%c4, %c0_6] : memref<16x128xf32, #tpu.memory_space<vmem>>, vector<1x64xf32>
    %c5 = arith.constant 5 : index
    %c0_7 = arith.constant 0 : index
    %6 = vector.load %arg3[%c5, %c0_7] : memref<16x128xf32, #tpu.memory_space<vmem>>, vector<1x32xf32>
    %c6 = arith.constant 6 : index
    %c0_8 = arith.constant 0 : index
    %7 = vector.load %arg3[%c6, %c0_8] : memref<16x128xf32, #tpu.memory_space<vmem>>, vector<1x32xf32>
    %c7 = arith.constant 7 : index
    %c0_9 = arith.constant 0 : index
    %8 = vector.load %arg3[%c7, %c0_9] : memref<16x128xf32, #tpu.memory_space<vmem>>, vector<1x32xf32>
    %c8 = arith.constant 8 : index
    %c0_10 = arith.constant 0 : index
    %9 = vector.load %arg3[%c8, %c0_10] : memref<16x128xf32, #tpu.memory_space<vmem>>, vector<1x64xf32>
    %c9 = arith.constant 9 : index
    %c0_11 = arith.constant 0 : index
    %10 = vector.load %arg3[%c9, %c0_11] : memref<16x128xf32, #tpu.memory_space<vmem>>, vector<1x128xf32>
    %c0_12 = arith.constant 0 : index
    %c0_13 = arith.constant 0 : index
    %11 = vector.load %arg2[%c0_12, %c0_13] : memref<256x128xf32, #tpu.memory_space<vmem>>, vector<32x96xf32>
    %c64 = arith.constant 64 : index
    %c0_14 = arith.constant 0 : index
    %12 = vector.load %arg2[%c64, %c0_14] : memref<256x128xf32, #tpu.memory_space<vmem>>, vector<32x64xf32>
    %c96 = arith.constant 96 : index
    %c0_15 = arith.constant 0 : index
    %13 = vector.load %arg2[%c96, %c0_15] : memref<256x128xf32, #tpu.memory_space<vmem>>, vector<64x32xf32>
    %c160 = arith.constant 160 : index
    %c0_16 = arith.constant 0 : index
    %14 = vector.load %arg2[%c160, %c0_16] : memref<256x128xf32, #tpu.memory_space<vmem>>, vector<32x64xf32>
    %c192 = arith.constant 192 : index
    %c0_17 = arith.constant 0 : index
    %15 = vector.load %arg2[%c192, %c0_17] : memref<256x128xf32, #tpu.memory_space<vmem>>, vector<64x128xf32>
    %cst = arith.constant dense<0.000000e+00> : vector<16x96xf32>
    %16 = tpu.matmul %0, %11, %cst {dimension_numbers = #tpu.dot_dimension_numbers<[1], [0], [0], [1], [0, 0, 1, 1], [], []>} : vector<16x32xf32>, vector<32x96xf32>, vector<16x96xf32> -> vector<16x96xf32>
    %17 = vector.broadcast %1 : vector<1x96xf32> to vector<16x96xf32>
    %18 = arith.addf %16, %17 : vector<16x96xf32>
    %cst_18 = arith.constant 0.000000e+00 : f32
    %19 = vector.broadcast %cst_18 : f32 to vector<8x32xf32>
    %20 = vector.extract_strided_slice %18 {offsets = [0, 0], sizes = [8, 8], strides = [1, 1]} : vector<16x96xf32> to vector<8x8xf32>
    %21 = vector.extract_strided_slice %18 {offsets = [0, 32], sizes = [8, 8], strides = [1, 1]} : vector<16x96xf32> to vector<8x8xf32>
    %22 = vector.extract_strided_slice %18 {offsets = [0, 64], sizes = [8, 8], strides = [1, 1]} : vector<16x96xf32> to vector<8x8xf32>
    %cst_19 = arith.constant dense<0.000000e+00> : vector<8x8xf32>
    %23 = tpu.matmul %20, %21, %cst_19 {dimension_numbers = #tpu.dot_dimension_numbers<[1], [1], [0], [0], [0, 0, 1, 0], [], []>} : vector<8x8xf32>, vector<8x8xf32>, vector<8x8xf32> -> vector<8x8xf32>
    %cst_20 = arith.constant 0.353553385 : f32
    %24 = vector.broadcast %cst_20 : f32 to vector<8x8xf32>
    %25 = arith.mulf %23, %24 : vector<8x8xf32>
    %cst_21 = arith.constant dense<0xFF800000> : vector<8xf32>
    %26 = vector.multi_reduction <maximumf>, %25, %cst_21 [1] : vector<8x8xf32> to vector<8xf32>
    %27 = vector.shape_cast %26 : vector<8xf32> to vector<8x1xf32>
    %28 = vector.broadcast %27 : vector<8x1xf32> to vector<8x8xf32>
    %29 = arith.subf %25, %28 : vector<8x8xf32>
    %30 = math.exp %29 : vector<8x8xf32>
    %cst_22 = arith.constant dense<0.000000e+00> : vector<8xf32>
    %31 = vector.multi_reduction <add>, %30, %cst_22 [1] : vector<8x8xf32> to vector<8xf32>
    %32 = vector.shape_cast %31 : vector<8xf32> to vector<8x1xf32>
    %33 = tpu.reciprocal %32 {approx = true} : vector<8x1xf32> -> vector<8x1xf32>
    %34 = vector.broadcast %33 : vector<8x1xf32> to vector<8x8xf32>
    %35 = arith.mulf %30, %34 : vector<8x8xf32>
    %cst_23 = arith.constant dense<0.000000e+00> : vector<8x8xf32>
    %36 = tpu.matmul %35, %22, %cst_23 {dimension_numbers = #tpu.dot_dimension_numbers<[1], [0], [0], [1], [0, 0, 1, 1], [], []>} : vector<8x8xf32>, vector<8x8xf32>, vector<8x8xf32> -> vector<8x8xf32>
    %c32 = arith.constant 32 : index
    %c0_24 = arith.constant 0 : index
    %37 = vector.load %arg2[%c32, %c0_24] : memref<256x128xf32, #tpu.memory_space<vmem>>, vector<8x32xf32>
    %cst_25 = arith.constant dense<0.000000e+00> : vector<8x32xf32>
    %38 = tpu.matmul %36, %37, %cst_25 {dimension_numbers = #tpu.dot_dimension_numbers<[1], [0], [0], [1], [0, 0, 1, 1], [], []>} : vector<8x8xf32>, vector<8x32xf32>, vector<8x32xf32> -> vector<8x32xf32>
    %39 = arith.addf %19, %38 : vector<8x32xf32>
    %40 = vector.extract_strided_slice %18 {offsets = [0, 8], sizes = [8, 8], strides = [1, 1]} : vector<16x96xf32> to vector<8x8xf32>
    %41 = vector.extract_strided_slice %18 {offsets = [0, 40], sizes = [8, 8], strides = [1, 1]} : vector<16x96xf32> to vector<8x8xf32>
    %42 = vector.extract_strided_slice %18 {offsets = [0, 72], sizes = [8, 8], strides = [1, 1]} : vector<16x96xf32> to vector<8x8xf32>
    %cst_26 = arith.constant dense<0.000000e+00> : vector<8x8xf32>
    %43 = tpu.matmul %40, %41, %cst_26 {dimension_numbers = #tpu.dot_dimension_numbers<[1], [1], [0], [0], [0, 0, 1, 0], [], []>} : vector<8x8xf32>, vector<8x8xf32>, vector<8x8xf32> -> vector<8x8xf32>
    %cst_27 = arith.constant 0.353553385 : f32
    %44 = vector.broadcast %cst_27 : f32 to vector<8x8xf32>
    %45 = arith.mulf %43, %44 : vector<8x8xf32>
    %cst_28 = arith.constant dense<0xFF800000> : vector<8xf32>
    %46 = vector.multi_reduction <maximumf>, %45, %cst_28 [1] : vector<8x8xf32> to vector<8xf32>
    %47 = vector.shape_cast %46 : vector<8xf32> to vector<8x1xf32>
    %48 = vector.broadcast %47 : vector<8x1xf32> to vector<8x8xf32>
    %49 = arith.subf %45, %48 : vector<8x8xf32>
    %50 = math.exp %49 : vector<8x8xf32>
    %cst_29 = arith.constant dense<0.000000e+00> : vector<8xf32>
    %51 = vector.multi_reduction <add>, %50, %cst_29 [1] : vector<8x8xf32> to vector<8xf32>
    %52 = vector.shape_cast %51 : vector<8xf32> to vector<8x1xf32>
    %53 = tpu.reciprocal %52 {approx = true} : vector<8x1xf32> -> vector<8x1xf32>
    %54 = vector.broadcast %53 : vector<8x1xf32> to vector<8x8xf32>
    %55 = arith.mulf %50, %54 : vector<8x8xf32>
    %cst_30 = arith.constant dense<0.000000e+00> : vector<8x8xf32>
    %56 = tpu.matmul %55, %42, %cst_30 {dimension_numbers = #tpu.dot_dimension_numbers<[1], [0], [0], [1], [0, 0, 1, 1], [], []>} : vector<8x8xf32>, vector<8x8xf32>, vector<8x8xf32> -> vector<8x8xf32>
    %c40 = arith.constant 40 : index
    %c0_31 = arith.constant 0 : index
    %57 = vector.load %arg2[%c40, %c0_31] : memref<256x128xf32, #tpu.memory_space<vmem>>, vector<8x32xf32>
    %cst_32 = arith.constant dense<0.000000e+00> : vector<8x32xf32>
    %58 = tpu.matmul %56, %57, %cst_32 {dimension_numbers = #tpu.dot_dimension_numbers<[1], [0], [0], [1], [0, 0, 1, 1], [], []>} : vector<8x8xf32>, vector<8x32xf32>, vector<8x32xf32> -> vector<8x32xf32>
    %59 = arith.addf %39, %58 : vector<8x32xf32>
    %60 = vector.extract_strided_slice %18 {offsets = [0, 16], sizes = [8, 8], strides = [1, 1]} : vector<16x96xf32> to vector<8x8xf32>
    %61 = vector.extract_strided_slice %18 {offsets = [0, 48], sizes = [8, 8], strides = [1, 1]} : vector<16x96xf32> to vector<8x8xf32>
    %62 = vector.extract_strided_slice %18 {offsets = [0, 80], sizes = [8, 8], strides = [1, 1]} : vector<16x96xf32> to vector<8x8xf32>
    %cst_33 = arith.constant dense<0.000000e+00> : vector<8x8xf32>
    %63 = tpu.matmul %60, %61, %cst_33 {dimension_numbers = #tpu.dot_dimension_numbers<[1], [1], [0], [0], [0, 0, 1, 0], [], []>} : vector<8x8xf32>, vector<8x8xf32>, vector<8x8xf32> -> vector<8x8xf32>
    %cst_34 = arith.constant 0.353553385 : f32
    %64 = vector.broadcast %cst_34 : f32 to vector<8x8xf32>
    %65 = arith.mulf %63, %64 : vector<8x8xf32>
    %cst_35 = arith.constant dense<0xFF800000> : vector<8xf32>
    %66 = vector.multi_reduction <maximumf>, %65, %cst_35 [1] : vector<8x8xf32> to vector<8xf32>
    %67 = vector.shape_cast %66 : vector<8xf32> to vector<8x1xf32>
    %68 = vector.broadcast %67 : vector<8x1xf32> to vector<8x8xf32>
    %69 = arith.subf %65, %68 : vector<8x8xf32>
    %70 = math.exp %69 : vector<8x8xf32>
    %cst_36 = arith.constant dense<0.000000e+00> : vector<8xf32>
    %71 = vector.multi_reduction <add>, %70, %cst_36 [1] : vector<8x8xf32> to vector<8xf32>
    %72 = vector.shape_cast %71 : vector<8xf32> to vector<8x1xf32>
    %73 = tpu.reciprocal %72 {approx = true} : vector<8x1xf32> -> vector<8x1xf32>
    %74 = vector.broadcast %73 : vector<8x1xf32> to vector<8x8xf32>
    %75 = arith.mulf %70, %74 : vector<8x8xf32>
    %cst_37 = arith.constant dense<0.000000e+00> : vector<8x8xf32>
    %76 = tpu.matmul %75, %62, %cst_37 {dimension_numbers = #tpu.dot_dimension_numbers<[1], [0], [0], [1], [0, 0, 1, 1], [], []>} : vector<8x8xf32>, vector<8x8xf32>, vector<8x8xf32> -> vector<8x8xf32>
    %c48 = arith.constant 48 : index
    %c0_38 = arith.constant 0 : index
    %77 = vector.load %arg2[%c48, %c0_38] : memref<256x128xf32, #tpu.memory_space<vmem>>, vector<8x32xf32>
    %cst_39 = arith.constant dense<0.000000e+00> : vector<8x32xf32>
    %78 = tpu.matmul %76, %77, %cst_39 {dimension_numbers = #tpu.dot_dimension_numbers<[1], [0], [0], [1], [0, 0, 1, 1], [], []>} : vector<8x8xf32>, vector<8x32xf32>, vector<8x32xf32> -> vector<8x32xf32>
    %79 = arith.addf %59, %78 : vector<8x32xf32>
    %80 = vector.extract_strided_slice %18 {offsets = [0, 24], sizes = [8, 8], strides = [1, 1]} : vector<16x96xf32> to vector<8x8xf32>
    %81 = vector.extract_strided_slice %18 {offsets = [0, 56], sizes = [8, 8], strides = [1, 1]} : vector<16x96xf32> to vector<8x8xf32>
    %82 = vector.extract_strided_slice %18 {offsets = [0, 88], sizes = [8, 8], strides = [1, 1]} : vector<16x96xf32> to vector<8x8xf32>
    %cst_40 = arith.constant dense<0.000000e+00> : vector<8x8xf32>
    %83 = tpu.matmul %80, %81, %cst_40 {dimension_numbers = #tpu.dot_dimension_numbers<[1], [1], [0], [0], [0, 0, 1, 0], [], []>} : vector<8x8xf32>, vector<8x8xf32>, vector<8x8xf32> -> vector<8x8xf32>
    %cst_41 = arith.constant 0.353553385 : f32
    %84 = vector.broadcast %cst_41 : f32 to vector<8x8xf32>
    %85 = arith.mulf %83, %84 : vector<8x8xf32>
    %cst_42 = arith.constant dense<0xFF800000> : vector<8xf32>
    %86 = vector.multi_reduction <maximumf>, %85, %cst_42 [1] : vector<8x8xf32> to vector<8xf32>
    %87 = vector.shape_cast %86 : vector<8xf32> to vector<8x1xf32>
    %88 = vector.broadcast %87 : vector<8x1xf32> to vector<8x8xf32>
    %89 = arith.subf %85, %88 : vector<8x8xf32>
    %90 = math.exp %89 : vector<8x8xf32>
    %cst_43 = arith.constant dense<0.000000e+00> : vector<8xf32>
    %91 = vector.multi_reduction <add>, %90, %cst_43 [1] : vector<8x8xf32> to vector<8xf32>
    %92 = vector.shape_cast %91 : vector<8xf32> to vector<8x1xf32>
    %93 = tpu.reciprocal %92 {approx = true} : vector<8x1xf32> -> vector<8x1xf32>
    %94 = vector.broadcast %93 : vector<8x1xf32> to vector<8x8xf32>
    %95 = arith.mulf %90, %94 : vector<8x8xf32>
    %cst_44 = arith.constant dense<0.000000e+00> : vector<8x8xf32>
    %96 = tpu.matmul %95, %82, %cst_44 {dimension_numbers = #tpu.dot_dimension_numbers<[1], [0], [0], [1], [0, 0, 1, 1], [], []>} : vector<8x8xf32>, vector<8x8xf32>, vector<8x8xf32> -> vector<8x8xf32>
    %c56 = arith.constant 56 : index
    %c0_45 = arith.constant 0 : index
    %97 = vector.load %arg2[%c56, %c0_45] : memref<256x128xf32, #tpu.memory_space<vmem>>, vector<8x32xf32>
    %cst_46 = arith.constant dense<0.000000e+00> : vector<8x32xf32>
    %98 = tpu.matmul %96, %97, %cst_46 {dimension_numbers = #tpu.dot_dimension_numbers<[1], [0], [0], [1], [0, 0, 1, 1], [], []>} : vector<8x8xf32>, vector<8x32xf32>, vector<8x32xf32> -> vector<8x32xf32>
    %99 = arith.addf %79, %98 : vector<8x32xf32>
    %cst_47 = arith.constant 0.000000e+00 : f32
    %100 = vector.broadcast %cst_47 : f32 to vector<8x32xf32>
    %101 = vector.extract_strided_slice %18 {offsets = [8, 0], sizes = [8, 8], strides = [1, 1]} : vector<16x96xf32> to vector<8x8xf32>
    %102 = vector.extract_strided_slice %18 {offsets = [8, 32], sizes = [8, 8], strides = [1, 1]} : vector<16x96xf32> to vector<8x8xf32>
    %103 = vector.extract_strided_slice %18 {offsets = [8, 64], sizes = [8, 8], strides = [1, 1]} : vector<16x96xf32> to vector<8x8xf32>
    %cst_48 = arith.constant dense<0.000000e+00> : vector<8x8xf32>
    %104 = tpu.matmul %101, %102, %cst_48 {dimension_numbers = #tpu.dot_dimension_numbers<[1], [1], [0], [0], [0, 0, 1, 0], [], []>} : vector<8x8xf32>, vector<8x8xf32>, vector<8x8xf32> -> vector<8x8xf32>
    %cst_49 = arith.constant 0.353553385 : f32
    %105 = vector.broadcast %cst_49 : f32 to vector<8x8xf32>
    %106 = arith.mulf %104, %105 : vector<8x8xf32>
    %cst_50 = arith.constant dense<0xFF800000> : vector<8xf32>
    %107 = vector.multi_reduction <maximumf>, %106, %cst_50 [1] : vector<8x8xf32> to vector<8xf32>
    %108 = vector.shape_cast %107 : vector<8xf32> to vector<8x1xf32>
    %109 = vector.broadcast %108 : vector<8x1xf32> to vector<8x8xf32>
    %110 = arith.subf %106, %109 : vector<8x8xf32>
    %111 = math.exp %110 : vector<8x8xf32>
    %cst_51 = arith.constant dense<0.000000e+00> : vector<8xf32>
    %112 = vector.multi_reduction <add>, %111, %cst_51 [1] : vector<8x8xf32> to vector<8xf32>
    %113 = vector.shape_cast %112 : vector<8xf32> to vector<8x1xf32>
    %114 = tpu.reciprocal %113 {approx = true} : vector<8x1xf32> -> vector<8x1xf32>
    %115 = vector.broadcast %114 : vector<8x1xf32> to vector<8x8xf32>
    %116 = arith.mulf %111, %115 : vector<8x8xf32>
    %cst_52 = arith.constant dense<0.000000e+00> : vector<8x8xf32>
    %117 = tpu.matmul %116, %103, %cst_52 {dimension_numbers = #tpu.dot_dimension_numbers<[1], [0], [0], [1], [0, 0, 1, 1], [], []>} : vector<8x8xf32>, vector<8x8xf32>, vector<8x8xf32> -> vector<8x8xf32>
    %c32_53 = arith.constant 32 : index
    %c0_54 = arith.constant 0 : index
    %118 = vector.load %arg2[%c32_53, %c0_54] : memref<256x128xf32, #tpu.memory_space<vmem>>, vector<8x32xf32>
    %cst_55 = arith.constant dense<0.000000e+00> : vector<8x32xf32>
    %119 = tpu.matmul %117, %118, %cst_55 {dimension_numbers = #tpu.dot_dimension_numbers<[1], [0], [0], [1], [0, 0, 1, 1], [], []>} : vector<8x8xf32>, vector<8x32xf32>, vector<8x32xf32> -> vector<8x32xf32>
    %120 = arith.addf %100, %119 : vector<8x32xf32>
    %121 = vector.extract_strided_slice %18 {offsets = [8, 8], sizes = [8, 8], strides = [1, 1]} : vector<16x96xf32> to vector<8x8xf32>
    %122 = vector.extract_strided_slice %18 {offsets = [8, 40], sizes = [8, 8], strides = [1, 1]} : vector<16x96xf32> to vector<8x8xf32>
    %123 = vector.extract_strided_slice %18 {offsets = [8, 72], sizes = [8, 8], strides = [1, 1]} : vector<16x96xf32> to vector<8x8xf32>
    %cst_56 = arith.constant dense<0.000000e+00> : vector<8x8xf32>
    %124 = tpu.matmul %121, %122, %cst_56 {dimension_numbers = #tpu.dot_dimension_numbers<[1], [1], [0], [0], [0, 0, 1, 0], [], []>} : vector<8x8xf32>, vector<8x8xf32>, vector<8x8xf32> -> vector<8x8xf32>
    %cst_57 = arith.constant 0.353553385 : f32
    %125 = vector.broadcast %cst_57 : f32 to vector<8x8xf32>
    %126 = arith.mulf %124, %125 : vector<8x8xf32>
    %cst_58 = arith.constant dense<0xFF800000> : vector<8xf32>
    %127 = vector.multi_reduction <maximumf>, %126, %cst_58 [1] : vector<8x8xf32> to vector<8xf32>
    %128 = vector.shape_cast %127 : vector<8xf32> to vector<8x1xf32>
    %129 = vector.broadcast %128 : vector<8x1xf32> to vector<8x8xf32>
    %130 = arith.subf %126, %129 : vector<8x8xf32>
    %131 = math.exp %130 : vector<8x8xf32>
    %cst_59 = arith.constant dense<0.000000e+00> : vector<8xf32>
    %132 = vector.multi_reduction <add>, %131, %cst_59 [1] : vector<8x8xf32> to vector<8xf32>
    %133 = vector.shape_cast %132 : vector<8xf32> to vector<8x1xf32>
    %134 = tpu.reciprocal %133 {approx = true} : vector<8x1xf32> -> vector<8x1xf32>
    %135 = vector.broadcast %134 : vector<8x1xf32> to vector<8x8xf32>
    %136 = arith.mulf %131, %135 : vector<8x8xf32>
    %cst_60 = arith.constant dense<0.000000e+00> : vector<8x8xf32>
    %137 = tpu.matmul %136, %123, %cst_60 {dimension_numbers = #tpu.dot_dimension_numbers<[1], [0], [0], [1], [0, 0, 1, 1], [], []>} : vector<8x8xf32>, vector<8x8xf32>, vector<8x8xf32> -> vector<8x8xf32>
    %c40_61 = arith.constant 40 : index
    %c0_62 = arith.constant 0 : index
    %138 = vector.load %arg2[%c40_61, %c0_62] : memref<256x128xf32, #tpu.memory_space<vmem>>, vector<8x32xf32>
    %cst_63 = arith.constant dense<0.000000e+00> : vector<8x32xf32>
    %139 = tpu.matmul %137, %138, %cst_63 {dimension_numbers = #tpu.dot_dimension_numbers<[1], [0], [0], [1], [0, 0, 1, 1], [], []>} : vector<8x8xf32>, vector<8x32xf32>, vector<8x32xf32> -> vector<8x32xf32>
    %140 = arith.addf %120, %139 : vector<8x32xf32>
    %141 = vector.extract_strided_slice %18 {offsets = [8, 16], sizes = [8, 8], strides = [1, 1]} : vector<16x96xf32> to vector<8x8xf32>
    %142 = vector.extract_strided_slice %18 {offsets = [8, 48], sizes = [8, 8], strides = [1, 1]} : vector<16x96xf32> to vector<8x8xf32>
    %143 = vector.extract_strided_slice %18 {offsets = [8, 80], sizes = [8, 8], strides = [1, 1]} : vector<16x96xf32> to vector<8x8xf32>
    %cst_64 = arith.constant dense<0.000000e+00> : vector<8x8xf32>
    %144 = tpu.matmul %141, %142, %cst_64 {dimension_numbers = #tpu.dot_dimension_numbers<[1], [1], [0], [0], [0, 0, 1, 0], [], []>} : vector<8x8xf32>, vector<8x8xf32>, vector<8x8xf32> -> vector<8x8xf32>
    %cst_65 = arith.constant 0.353553385 : f32
    %145 = vector.broadcast %cst_65 : f32 to vector<8x8xf32>
    %146 = arith.mulf %144, %145 : vector<8x8xf32>
    %cst_66 = arith.constant dense<0xFF800000> : vector<8xf32>
    %147 = vector.multi_reduction <maximumf>, %146, %cst_66 [1] : vector<8x8xf32> to vector<8xf32>
    %148 = vector.shape_cast %147 : vector<8xf32> to vector<8x1xf32>
    %149 = vector.broadcast %148 : vector<8x1xf32> to vector<8x8xf32>
    %150 = arith.subf %146, %149 : vector<8x8xf32>
    %151 = math.exp %150 : vector<8x8xf32>
    %cst_67 = arith.constant dense<0.000000e+00> : vector<8xf32>
    %152 = vector.multi_reduction <add>, %151, %cst_67 [1] : vector<8x8xf32> to vector<8xf32>
    %153 = vector.shape_cast %152 : vector<8xf32> to vector<8x1xf32>
    %154 = tpu.reciprocal %153 {approx = true} : vector<8x1xf32> -> vector<8x1xf32>
    %155 = vector.broadcast %154 : vector<8x1xf32> to vector<8x8xf32>
    %156 = arith.mulf %151, %155 : vector<8x8xf32>
    %cst_68 = arith.constant dense<0.000000e+00> : vector<8x8xf32>
    %157 = tpu.matmul %156, %143, %cst_68 {dimension_numbers = #tpu.dot_dimension_numbers<[1], [0], [0], [1], [0, 0, 1, 1], [], []>} : vector<8x8xf32>, vector<8x8xf32>, vector<8x8xf32> -> vector<8x8xf32>
    %c48_69 = arith.constant 48 : index
    %c0_70 = arith.constant 0 : index
    %158 = vector.load %arg2[%c48_69, %c0_70] : memref<256x128xf32, #tpu.memory_space<vmem>>, vector<8x32xf32>
    %cst_71 = arith.constant dense<0.000000e+00> : vector<8x32xf32>
    %159 = tpu.matmul %157, %158, %cst_71 {dimension_numbers = #tpu.dot_dimension_numbers<[1], [0], [0], [1], [0, 0, 1, 1], [], []>} : vector<8x8xf32>, vector<8x32xf32>, vector<8x32xf32> -> vector<8x32xf32>
    %160 = arith.addf %140, %159 : vector<8x32xf32>
    %161 = vector.extract_strided_slice %18 {offsets = [8, 24], sizes = [8, 8], strides = [1, 1]} : vector<16x96xf32> to vector<8x8xf32>
    %162 = vector.extract_strided_slice %18 {offsets = [8, 56], sizes = [8, 8], strides = [1, 1]} : vector<16x96xf32> to vector<8x8xf32>
    %163 = vector.extract_strided_slice %18 {offsets = [8, 88], sizes = [8, 8], strides = [1, 1]} : vector<16x96xf32> to vector<8x8xf32>
    %cst_72 = arith.constant dense<0.000000e+00> : vector<8x8xf32>
    %164 = tpu.matmul %161, %162, %cst_72 {dimension_numbers = #tpu.dot_dimension_numbers<[1], [1], [0], [0], [0, 0, 1, 0], [], []>} : vector<8x8xf32>, vector<8x8xf32>, vector<8x8xf32> -> vector<8x8xf32>
    %cst_73 = arith.constant 0.353553385 : f32
    %165 = vector.broadcast %cst_73 : f32 to vector<8x8xf32>
    %166 = arith.mulf %164, %165 : vector<8x8xf32>
    %cst_74 = arith.constant dense<0xFF800000> : vector<8xf32>
    %167 = vector.multi_reduction <maximumf>, %166, %cst_74 [1] : vector<8x8xf32> to vector<8xf32>
    %168 = vector.shape_cast %167 : vector<8xf32> to vector<8x1xf32>
    %169 = vector.broadcast %168 : vector<8x1xf32> to vector<8x8xf32>
    %170 = arith.subf %166, %169 : vector<8x8xf32>
    %171 = math.exp %170 : vector<8x8xf32>
    %cst_75 = arith.constant dense<0.000000e+00> : vector<8xf32>
    %172 = vector.multi_reduction <add>, %171, %cst_75 [1] : vector<8x8xf32> to vector<8xf32>
    %173 = vector.shape_cast %172 : vector<8xf32> to vector<8x1xf32>
    %174 = tpu.reciprocal %173 {approx = true} : vector<8x1xf32> -> vector<8x1xf32>
    %175 = vector.broadcast %174 : vector<8x1xf32> to vector<8x8xf32>
    %176 = arith.mulf %171, %175 : vector<8x8xf32>
    %cst_76 = arith.constant dense<0.000000e+00> : vector<8x8xf32>
    %177 = tpu.matmul %176, %163, %cst_76 {dimension_numbers = #tpu.dot_dimension_numbers<[1], [0], [0], [1], [0, 0, 1, 1], [], []>} : vector<8x8xf32>, vector<8x8xf32>, vector<8x8xf32> -> vector<8x8xf32>
    %c56_77 = arith.constant 56 : index
    %c0_78 = arith.constant 0 : index
    %178 = vector.load %arg2[%c56_77, %c0_78] : memref<256x128xf32, #tpu.memory_space<vmem>>, vector<8x32xf32>
    %cst_79 = arith.constant dense<0.000000e+00> : vector<8x32xf32>
    %179 = tpu.matmul %177, %178, %cst_79 {dimension_numbers = #tpu.dot_dimension_numbers<[1], [0], [0], [1], [0, 0, 1, 1], [], []>} : vector<8x8xf32>, vector<8x32xf32>, vector<8x32xf32> -> vector<8x32xf32>
    %180 = arith.addf %160, %179 : vector<8x32xf32>
    %181 = tpu.concatenate %99, %180 in 0 : vector<8x32xf32>, vector<8x32xf32> -> vector<16x32xf32>
    %182 = vector.broadcast %2 : vector<1x32xf32> to vector<16x32xf32>
    %183 = arith.addf %181, %182 : vector<16x32xf32>
    %184 = arith.addf %0, %183 : vector<16x32xf32>
    %cst_80 = arith.constant dense<0.000000e+00> : vector<16xf32>
    %185 = vector.multi_reduction <add>, %184, %cst_80 [1] : vector<16x32xf32> to vector<16xf32>
    %186 = vector.shape_cast %185 : vector<16xf32> to vector<16x1xf32>
    %cst_81 = arith.constant 3.200000e+01 : f32
    %187 = vector.broadcast %cst_81 : f32 to vector<16x1xf32>
    %188 = arith.divf %186, %187 : vector<16x1xf32>
    %189 = vector.broadcast %188 : vector<16x1xf32> to vector<16x32xf32>
    %190 = arith.subf %184, %189 : vector<16x32xf32>
    %191 = arith.mulf %190, %190 : vector<16x32xf32>
    %cst_82 = arith.constant dense<0.000000e+00> : vector<16xf32>
    %192 = vector.multi_reduction <add>, %191, %cst_82 [1] : vector<16x32xf32> to vector<16xf32>
    %193 = vector.shape_cast %192 : vector<16xf32> to vector<16x1xf32>
    %cst_83 = arith.constant 3.200000e+01 : f32
    %194 = vector.broadcast %cst_83 : f32 to vector<16x1xf32>
    %195 = arith.divf %193, %194 : vector<16x1xf32>
    %196 = vector.broadcast %188 : vector<16x1xf32> to vector<16x32xf32>
    %197 = arith.subf %184, %196 : vector<16x32xf32>
    %cst_84 = arith.constant 9.99999974E-6 : f32
    %198 = vector.broadcast %cst_84 : f32 to vector<16x1xf32>
    %199 = arith.addf %195, %198 : vector<16x1xf32>
    %200 = math.rsqrt %199 : vector<16x1xf32>
    %201 = vector.broadcast %200 : vector<16x1xf32> to vector<16x32xf32>
    %202 = arith.mulf %197, %201 : vector<16x32xf32>
    %203 = vector.broadcast %3 : vector<1x32xf32> to vector<16x32xf32>
    %204 = arith.mulf %202, %203 : vector<16x32xf32>
    %205 = vector.broadcast %4 : vector<1x32xf32> to vector<16x32xf32>
    %206 = arith.addf %204, %205 : vector<16x32xf32>
    %cst_85 = arith.constant dense<0.000000e+00> : vector<16x64xf32>
    %207 = tpu.matmul %206, %12, %cst_85 {dimension_numbers = #tpu.dot_dimension_numbers<[1], [0], [0], [1], [0, 0, 1, 1], [], []>} : vector<16x32xf32>, vector<32x64xf32>, vector<16x64xf32> -> vector<16x64xf32>
    %208 = vector.broadcast %5 : vector<1x64xf32> to vector<16x64xf32>
    %209 = arith.addf %207, %208 : vector<16x64xf32>
    %cst_86 = arith.constant 0.000000e+00 : f32
    %210 = vector.broadcast %cst_86 : f32 to vector<16x64xf32>
    %211 = arith.maximumf %209, %210 : vector<16x64xf32>
    %cst_87 = arith.constant dense<0.000000e+00> : vector<16x32xf32>
    %212 = tpu.matmul %211, %13, %cst_87 {dimension_numbers = #tpu.dot_dimension_numbers<[1], [0], [0], [1], [0, 0, 1, 1], [], []>} : vector<16x64xf32>, vector<64x32xf32>, vector<16x32xf32> -> vector<16x32xf32>
    %213 = vector.broadcast %6 : vector<1x32xf32> to vector<16x32xf32>
    %214 = arith.addf %212, %213 : vector<16x32xf32>
    %215 = arith.addf %206, %214 : vector<16x32xf32>
    %cst_88 = arith.constant dense<0.000000e+00> : vector<16xf32>
    %216 = vector.multi_reduction <add>, %215, %cst_88 [1] : vector<16x32xf32> to vector<16xf32>
    %217 = vector.shape_cast %216 : vector<16xf32> to vector<16x1xf32>
    %cst_89 = arith.constant 3.200000e+01 : f32
    %218 = vector.broadcast %cst_89 : f32 to vector<16x1xf32>
    %219 = arith.divf %217, %218 : vector<16x1xf32>
    %220 = vector.broadcast %219 : vector<16x1xf32> to vector<16x32xf32>
    %221 = arith.subf %215, %220 : vector<16x32xf32>
    %222 = arith.mulf %221, %221 : vector<16x32xf32>
    %cst_90 = arith.constant dense<0.000000e+00> : vector<16xf32>
    %223 = vector.multi_reduction <add>, %222, %cst_90 [1] : vector<16x32xf32> to vector<16xf32>
    %224 = vector.shape_cast %223 : vector<16xf32> to vector<16x1xf32>
    %cst_91 = arith.constant 3.200000e+01 : f32
    %225 = vector.broadcast %cst_91 : f32 to vector<16x1xf32>
    %226 = arith.divf %224, %225 : vector<16x1xf32>
    %227 = vector.broadcast %219 : vector<16x1xf32> to vector<16x32xf32>
    %228 = arith.subf %215, %227 : vector<16x32xf32>
    %cst_92 = arith.constant 9.99999974E-6 : f32
    %229 = vector.broadcast %cst_92 : f32 to vector<16x1xf32>
    %230 = arith.addf %226, %229 : vector<16x1xf32>
    %231 = math.rsqrt %230 : vector<16x1xf32>
    %232 = vector.broadcast %231 : vector<16x1xf32> to vector<16x32xf32>
    %233 = arith.mulf %228, %232 : vector<16x32xf32>
    %234 = vector.broadcast %7 : vector<1x32xf32> to vector<16x32xf32>
    %235 = arith.mulf %233, %234 : vector<16x32xf32>
    %236 = vector.broadcast %8 : vector<1x32xf32> to vector<16x32xf32>
    %237 = arith.addf %235, %236 : vector<16x32xf32>
    %238 = vector.extract_strided_slice %237 {offsets = [7, 0], sizes = [1, 32], strides = [1, 1]} : vector<16x32xf32> to vector<1x32xf32>
    %239 = vector.extract_strided_slice %237 {offsets = [15, 0], sizes = [1, 32], strides = [1, 1]} : vector<16x32xf32> to vector<1x32xf32>
    %240 = tpu.concatenate %238, %239 in 0 : vector<1x32xf32>, vector<1x32xf32> -> vector<2x32xf32>
    %cst_93 = arith.constant dense<0.000000e+00> : vector<2x64xf32>
    %241 = tpu.matmul %240, %14, %cst_93 {dimension_numbers = #tpu.dot_dimension_numbers<[1], [0], [0], [1], [0, 0, 1, 1], [], []>} : vector<2x32xf32>, vector<32x64xf32>, vector<2x64xf32> -> vector<2x64xf32>
    %242 = vector.broadcast %9 : vector<1x64xf32> to vector<2x64xf32>
    %243 = arith.addf %241, %242 : vector<2x64xf32>
    %cst_94 = arith.constant 0.000000e+00 : f32
    %244 = vector.broadcast %cst_94 : f32 to vector<2x64xf32>
    %245 = arith.maximumf %243, %244 : vector<2x64xf32>
    %cst_95 = arith.constant dense<0.000000e+00> : vector<2x128xf32>
    %246 = tpu.matmul %245, %15, %cst_95 {dimension_numbers = #tpu.dot_dimension_numbers<[1], [0], [0], [1], [0, 0, 1, 1], [], []>} : vector<2x64xf32>, vector<64x128xf32>, vector<2x128xf32> -> vector<2x128xf32>
    %247 = vector.broadcast %10 : vector<1x128xf32> to vector<2x128xf32>
    %248 = arith.addf %246, %247 : vector<2x128xf32>
    %c0_96 = arith.constant 0 : index
    %c0_97 = arith.constant 0 : index
    %249 = vector.load %arg4[%c0_96, %c0_97] : memref<2x128xf32, #tpu.memory_space<vmem>>, vector<2x128xf32>
    tpu.vector_store %arg4[%c0_96, %c0_97], %248 {strides = array<i32>} : memref<2x128xf32, #tpu.memory_space<vmem>>, vector<2x128xf32>,
    return
  }
  func.func @transform_0(%arg0: i32) -> (i32, i32) {
    %c0_i32 = arith.constant 0 : i32
    %c0_i32_0 = arith.constant 0 : i32
    %c0_i32_1 = arith.constant 0 : i32
    return %c0_i32, %c0_i32_0 : i32, i32
  }
  func.func @transform_1(%arg0: i32) -> (i32, i32) {
    %c0_i32 = arith.constant 0 : i32
    %c0_i32_0 = arith.constant 0 : i32
    %c0_i32_1 = arith.constant 0 : i32
    return %c0_i32, %c0_i32_0 : i32, i32
  }
  func.func @transform_2(%arg0: i32) -> (i32, i32) {
    %c0_i32 = arith.constant 0 : i32
    %c0_i32_0 = arith.constant 0 : i32
    %c0_i32_1 = arith.constant 0 : i32
    return %c0_i32, %c0_i32_0 : i32, i32
  }
  func.func @transform_3(%arg0: i32) -> (i32, i32) {
    %c0_i32 = arith.constant 0 : i32
    %c0_i32_0 = arith.constant 0 : i32
    %c0_i32_1 = arith.constant 0 : i32
    return %c0_i32, %c0_i32_0 : i32, i32
  }
}

</mosaic_0001>

<bundles_post_ra>
// kernel: transformer_regressor.1
= control target key start
LH: loop header
LB: loop body
LE: loop exit
PB: predicated region body
PF: predicated region fallthrough
CT: control target
= control target key end

     0   :  { %vm58_vm0 = vcmask 261120   ;;  %v2916_v8 = vmov 0.0   ;;  %vm2917_vm1 = vmmov 0   ;;  %s2919_s26 = smov 96   ;;  %s2920_s27 = smov 88   ;;  %vm143_vm2 = vcmask 64512   ;;  %s3305_s1 = inlined_call_operand.vmem [shape: f32[256,128], index: 1, kind: input, shape index: {}]   ;;  %s3306_s0 = inlined_call_operand.vmem [shape: f32[16,32], index: 0, kind: input, shape index: {}]   ;;  %s3307_s2 = inlined_call_operand.vmem [shape: f32[16,128], index: 2, kind: input, shape index: {}]   ;;  %s3308_s3 = inlined_call_operand.vmem [shape: f32[2,128], index: 3, kind: output, shape index: {}]  }
   0x1   :  { %v26_v0 = vld [vmem:[%s3305_s1] sm:$0xff]  ;;  %v27_v1 = vld [vmem:[%s3305_s1 + $0x8] sm:$0xff]  ;;  %v28_v2 = vld [vmem:[%s3305_s1 + $0x10] sm:$0xff]  ;;  %2642 = vmatprep.subr.mxu0 %v2916_v8  ;;  %2644 = vmatprep.mubr.msk.f32.mxu0 %vm2917_vm1, %v2916_v8  ;;  %s2921_s28 = smov 56   ;;  %s2922_s29 = smov 64   ;;  %vm2197_vm3 = vcmask 523264  }
   0x2   :  { %v2812_v3 = vpack.c.bf16 %v27_v1, %v26_v0  ;;  %v29_v4 = vld [vmem:[%s3305_s1 + $0x18] sm:$0xff]  ;;  %v2965_v5 = vld [vmem:[%s3306_s0] sm:$0xff]  ;;  %v2972_v7 = vld [vmem:[%s3306_s0 + $0x8] sm:$0xff]  ;;  %s2918_s0 = smov 120   ;;  %s2923_s30 = smov 80   ;;  %vm2325_vm4 = vcmask 1040384  }
   0x3   :  { %v2816_v6 = vpack.c.bf16 %v29_v4, %v28_v2  ;;  %2629 = vmatprep.mubr.msk.f32.mxu1 %vm58_vm0, %v2965_v5  ;;  %v2487_v9 = vld [vmem:[%s3307_s2] ss:$0 sm:$0xff]  ;;  %s2924_s4 = smov 112   ;;  %v3021_v35 = vld [vmem:[%s3305_s1 + $0x28] sm:$0xff]  ;;  %s2925_s9 = smov 72  }
   0x4   :  { %2813 = vmatprep.subr.bf16.mxu1 %v2812_v3  ;;  %v3036_v44 = vld [vmem:[%s3305_s1 + $0x20] sm:$0xff]  ;;  %s2926_s10 = smov 104   ;;  %s2927_s11 = smov 48  }
   0x5   :  { %2815 = vmatpush3.bf16.msra.mxu1 %v2812_v3  ;;  %s2928_s14 = smov 40  }
   0x6   :  { %2817 = vmatprep.subr.bf16.mxu1 %v2816_v6 }
   0x9   :  { %2819 = vmatpush3.bf16.msra.mxu1 %v2816_v6 }
   0xa   :  { %2632 = vmatprep.subr.mxu1 %v2916_v8 }
   0xc   :  { %2630 = vmatmul.mubr.msk.f32.vlgmr.msra.gmra.mrb[0].mxu1 %vm58_vm0, %v2972_v7 }
   0xd   :  { %2634 = vmatprep.mubr.msk.f32.mxu1 %vm2917_vm1, %v2916_v8 }
  0xdf   :  { %v2631_v10 = vpop.f32.mrb[0].mxu1 }
  0xe0   :  { %v2985_v11 = vadd.f32 %v2631_v10, %v2487_v9  ;;  %v131_v12 = vpop.f32.mrb[1].mxu1  ;;  %v3075_v10 = vld [vmem:[%s3305_s1 + $0x30] sm:$0xff] }
  0xe1   :  { %v2987_v13 = vadd.f32 %v2487_v9, %v131_v12 }
  0xe3   :  { %307 = vrot.lane.b32.xlu1 %v2987_v13, %s2918_s0  ;;  %141 = vrot.lane.b32.xlu0 %v2987_v13, %s2919_s26 }
  0xe7   :  { %309 = vrot.lane.b32.xlu0 %v2987_v13, %s2920_s27 }
 0x155   :  { %v142_v14 = vpop.permute.xlu0 %141  ;;  %v308_v16 = vpop.permute.xlu1 %307 }
 0x156   :  { %2633 = vmatpush3.xpose.msk.msra.mxu1 %vm143_vm2, %v142_v14 }
 0x157   :  { %2637 = vmatprep.subr.mxu1 %v2916_v8 }
 0x159   :  { %2635 = vmatmul.mubr.msk.f32.vlgmr.msra.gmra.mrb[2].mxu1 %vm143_vm2, %v2987_v13  ;;  %v310_v15 = vpop.permute.xlu0 %309 }
 0x15a   :  { %2643 = vmatpush3.xpose.msk.msra.mxu0 %vm143_vm2, %v310_v15  ;;  %2639 = vmatprep.mubr.msk.f32.mxu1 %vm2917_vm1, %v2916_v8 }
 0x15b   :  { %2652 = vmatprep.subr.mxu0 %v2916_v8 }
 0x15d   :  { %2645 = vmatmul.mubr.msk.f32.vlgmr.msra.gmra.mrb[0].mxu0 %vm143_vm2, %v308_v16 }
 0x15e   :  { %2654 = vmatprep.mubr.msk.f32.mxu0 %vm2917_vm1, %v2916_v8  ;;  %2653 = vmatpush3.msra.mxu0 %v3021_v35 }
 0x15f   :  { %2662 = vmatprep.subr.mxu0 %v2916_v8 }
 0x22c   :  { %v214_v17 = vpop.f32.mrb[2].mxu1 }
 0x22d   :  { %v218_v18 = vmul.f32 0.35355338, %v214_v17  ;;  %v2636_v19 = vpop.f32.mrb[3].mxu1 }
 0x22f   :  { %v219_v20 = vsel %vm143_vm2, %v218_v18, -inf }
 0x230   :  { %220 = vmax.xlane.f32.xlu1 %v219_v20  ;;  %v381_v21 = vpop.f32.mrb[0].mxu0 }
 0x231   :  { %v385_v22 = vmul.f32 0.35355338, %v381_v21  ;;  %v2646_v23 = vpop.f32.mrb[1].mxu0 }
 0x233   :  { %v386_v24 = vsel %vm143_vm2, %v385_v22, -inf }
 0x234   :  { %387 = vmax.xlane.f32.xlu0 %v386_v24 }
 0x2bd   :  { %v221_v25 = vpop.xlane.xlu1 %220 }
 0x2be   :  { %v222_v26 = vsub.f32 %v218_v18, %v221_v25 }
 0x2c0   :  { %v223_v27 = vmul.f32 1.442695, %v222_v26 }
 0x2c1   :  { %v388_v28 = vpop.xlane.xlu0 %387 }
 0x2c2   :  { %2876 = vpow2.f32 %v223_v27  ;;  %v389_v29 = vsub.f32 %v385_v22, %v388_v28 }
 0x2c4   :  { %v390_v30 = vmul.f32 1.442695, %v389_v29 }
 0x2c6   :  { %2878 = vpow2.f32 %v390_v30 }
 0x2cc   :  { %v2877_v31 = vpop.eup %2876 }
 0x2cd   :  { %v225_v32 = vsel %vm143_vm2, %v2877_v31, 0.0 }
 0x2ce   :  { %226 = vadd.xlane.f32.xlu0 %v225_v32 }
 0x2d0   :  { %v2879_v33 = vpop.eup %2878 }
 0x2d1   :  { %v392_v34 = vsel %vm143_vm2, %v2879_v33, 0.0 }
 0x2d2   :  { %393 = vadd.xlane.f32.xlu1 %v392_v34 }
 0x2e3   :  { %397 = vrot.lane.b32.xlu1 %v2987_v13, %s2921_s28 }
 0x2e4   :  { %230 = vrot.lane.b32.xlu0 %v2987_v13, %s2922_s29 }
 0x2e7   :  { %622 = vrot.lane.b32.xlu1 %v2987_v13, %s2923_s30 }
 0x2e8   :  { %620 = vrot.lane.b32.xlu0 %v2987_v13, %s2924_s4 }
 0x35b   :  { %v227_v36 = vpop.xlane.xlu0 %226 }
 0x35c   :  { %2880 = vrcp.f32 %v227_v36 }
 0x35f   :  { %v394_v37 = vpop.xlane.xlu1 %393  ;;  %v231_v38 = vpop.permute.xlu0 %230 }
 0x360   :  { %2882 = vrcp.f32 %v394_v37  ;;  %2638 = vmatpush3.msra.mxu1 %v231_v38 }
 0x361   :  { %2647 = vmatprep.subr.mxu1 %v2916_v8 }
 0x363   :  { %v398_v41 = vpop.permute.xlu1 %397  ;;  %v621_v50 = vpop.permute.xlu0 %620 }
 0x366   :  { %v2881_v39 = vpop.eup %2880 }
 0x367   :  { %v229_v40 = vmul.f32 %v2881_v39, %v2877_v31  ;;  %v623_v48 = vpop.permute.xlu1 %622 }
 0x369   :  { %2640 = vmatmul.mubr.msk.f32.vlgmr.msra.gmra.mrb[4].mxu1 %vm143_vm2, %v229_v40 }
 0x36a   :  { %v2883_v42 = vpop.eup %2882  ;;  %2648 = vmatpush3.msra.mxu1 %v398_v41  ;;  %2649 = vmatprep.mubr.msk.f32.mxu1 %vm2917_vm1, %v2916_v8 }
 0x36b   :  { %v396_v43 = vmul.f32 %v2883_v42, %v2879_v33  ;;  %2657 = vmatprep.subr.mxu1 %v2916_v8  ;;  %v3111_v33 = vld [vmem:[%s3305_s1 + $0x38] sm:$0xff] }
 0x36d   :  { %2650 = vmatmul.mubr.msk.f32.vlgmr.msra.gmra.mrb[6].mxu1 %vm143_vm2, %v396_v43 }
 0x36e   :  { %2659 = vmatprep.mubr.msk.f32.mxu1 %vm2917_vm1, %v2916_v8  ;;  %2658 = vmatpush3.msra.mxu1 %v3036_v44 }
 0x36f   :  { %2667 = vmatprep.subr.mxu1 %v2916_v8 }
 0x43c   :  { %v302_v45 = vpop.f32.mrb[4].mxu1 }
 0x43d   :  { %v2641_v46 = vpop.f32.mrb[5].mxu1  ;;  %2660 = vmatmul.mubr.msk.f32.vlgmr.msra.gmra.mrb[8].mxu1 %vm143_vm2, %v302_v45 }
 0x43e   :  { %2669 = vmatprep.mubr.msk.f32.mxu1 %vm2917_vm1, %v2916_v8 }
 0x440   :  { %v469_v47 = vpop.f32.mrb[6].mxu1 }
 0x441   :  { %v2651_v49 = vpop.f32.mrb[7].mxu1  ;;  %2655 = vmatmul.mubr.msk.f32.vlgmr.msra.gmra.mrb[2].mxu0 %vm143_vm2, %v469_v47 }
 0x442   :  { %2663 = vmatpush3.xpose.msk.msra.mxu0 %vm143_vm2, %v623_v48  ;;  %2664 = vmatprep.mubr.msk.f32.mxu0 %vm2917_vm1, %v2916_v8 }
 0x443   :  { %2672 = vmatprep.subr.mxu0 %v2916_v8 }
 0x445   :  { %2665 = vmatmul.mubr.msk.f32.vlgmr.msra.gmra.mrb[4].mxu0 %vm143_vm2, %v621_v50 }
 0x446   :  { %2674 = vmatprep.mubr.msk.f32.mxu0 %vm2917_vm1, %v2916_v8  ;;  %2673 = vmatpush3.msra.mxu0 %v3075_v10 }
 0x447   :  { %2682 = vmatprep.subr.mxu0 %v2916_v8 }
 0x510   :  { %v616_v51 = vpop.f32.mrb[8].mxu1 }
 0x511   :  { %v2661_v52 = vpop.f32.mrb[9].mxu1 }
 0x514   :  { %v543_v53 = vpop.f32.mrb[2].mxu0 }
 0x515   :  { %v3051_v54 = vadd.f32 %v616_v51, %v543_v53  ;;  %v2656_v55 = vpop.f32.mrb[3].mxu0 }
 0x518   :  { %v694_v56 = vpop.f32.mrb[4].mxu0 }
 0x519   :  { %v698_v57 = vmul.f32 0.35355338, %v694_v56  ;;  %v2666_v58 = vpop.f32.mrb[5].mxu0 }
 0x51b   :  { %v699_v59 = vsel %vm143_vm2, %v698_v57, -inf }
 0x51c   :  { %700 = vmax.xlane.f32.xlu1 %v699_v59 }
 0x52d   :  { %863 = vrot.lane.b32.xlu1 %v2987_v13, %s2925_s9 }
 0x531   :  { %861 = vrot.lane.b32.xlu1 %v2987_v13, %s2926_s10 }
 0x535   :  { %1103 = vrot.lane.b32.xlu1 %v2985_v11, %s2919_s26 }
 0x5a9   :  { %v701_v60 = vpop.xlane.xlu1 %700 }
 0x5aa   :  { %v702_v61 = vsub.f32 %v698_v57, %v701_v60 }
 0x5ac   :  { %v703_v62 = vmul.f32 1.442695, %v702_v61 }
 0x5ad   :  { %v864_v4 = vpop.permute.xlu1 %863 }
 0x5ae   :  { %2884 = vpow2.f32 %v703_v62 }
 0x5b1   :  { %v862_v9 = vpop.permute.xlu1 %861 }
 0x5b5   :  { %v1104_v27 = vpop.permute.xlu1 %1103 }
 0x5b8   :  { %v2885_v63 = vpop.eup %2884 }
 0x5b9   :  { %v705_v0 = vsel %vm143_vm2, %v2885_v63, 0.0 }
 0x5ba   :  { %706 = vadd.xlane.f32.xlu0 %v705_v0 }
 0x5d0   :  { %710 = vrot.lane.b32.xlu0 %v2987_v13, %s2927_s11 }
 0x647   :  { %v707_v1 = vpop.xlane.xlu0 %706 }
 0x648   :  { %2886 = vrcp.f32 %v707_v1 }
 0x64b   :  { %v711_v2 = vpop.permute.xlu0 %710 }
 0x64c   :  { %2668 = vmatpush3.msra.mxu1 %v711_v2 }
 0x64d   :  { %2677 = vmatprep.subr.mxu1 %v2916_v8 }
 0x652   :  { %v2887_v3 = vpop.eup %2886 }
 0x653   :  { %v709_v6 = vmul.f32 %v2887_v3, %v2885_v63 }
 0x655   :  { %2670 = vmatmul.mubr.msk.f32.vlgmr.msra.gmra.mrb[10].mxu1 %vm143_vm2, %v709_v6 }
 0x656   :  { %2678 = vmatpush3.xpose.msk.msra.mxu1 %vm143_vm2, %v864_v4  ;;  %2679 = vmatprep.mubr.msk.f32.mxu1 %vm2917_vm1, %v2916_v8 }
 0x657   :  { %2687 = vmatprep.subr.mxu1 %v2916_v8 }
 0x659   :  { %2680 = vmatmul.mubr.msk.f32.vlgmr.msra.gmra.mrb[12].mxu1 %vm143_vm2, %v862_v9 }
 0x65a   :  { %2689 = vmatprep.mubr.msk.f32.mxu1 %vm2917_vm1, %v2916_v8  ;;  %2688 = vmatpush3.msra.mxu1 %v3111_v33 }
 0x65b   :  { %2697 = vmatprep.subr.mxu1 %v2916_v8 }
 0x728   :  { %v782_v12 = vpop.f32.mrb[10].mxu1 }
 0x729   :  { %v2671_v14 = vpop.f32.mrb[11].mxu1  ;;  %2675 = vmatmul.mubr.msk.f32.vlgmr.msra.gmra.mrb[6].mxu0 %vm143_vm2, %v782_v12 }
 0x72a   :  { %2684 = vmatprep.mubr.msk.f32.mxu0 %vm2917_vm1, %v2916_v8 }
 0x72c   :  { %v935_v15 = vpop.f32.mrb[12].mxu1 }
 0x72d   :  { %v939_v16 = vmul.f32 0.35355338, %v935_v15  ;;  %v2681_v17 = vpop.f32.mrb[13].mxu1 }
 0x72f   :  { %v940_v18 = vsel %vm143_vm2, %v939_v16, -inf }
 0x730   :  { %941 = vmax.xlane.f32.xlu0 %v940_v18 }
 0x746   :  { %951 = vrot.lane.b32.xlu0 %v2987_v13, %s2928_s14 }
 0x74a   :  { %1269 = vrot.lane.b32.xlu0 %v2985_v11, %s2920_s27 }
 0x7bd   :  { %v942_v19 = vpop.xlane.xlu0 %941 }
 0x7be   :  { %v943_v20 = vsub.f32 %v939_v16, %v942_v19 }
 0x7c0   :  { %v944_v21 = vmul.f32 1.442695, %v943_v20 }
 0x7c1   :  { %v952_v22 = vpop.permute.xlu0 %951 }
 0x7c2   :  { %2888 = vpow2.f32 %v944_v21  ;;  %2683 = vmatpush3.msra.mxu0 %v952_v22 }
 0x7c3   :  { %2692 = vmatprep.subr.mxu0 %v2916_v8 }
 0x7c5   :  { %v1270_v31 = vpop.permute.xlu0 %1269 }
 0x7cc   :  { %v2889_v23 = vpop.eup %2888 }
 0x7cd   :  { %v946_v24 = vsel %vm143_vm2, %v2889_v23, 0.0 }
 0x7ce   :  { %947 = vadd.xlane.f32.xlu1 %v946_v24 }
 0x7df   :  { %1267 = vrot.lane.b32.xlu1 %v2985_v11, %s2918_s0 }
 0x7fc   :  { %v856_v25 = vpop.f32.mrb[6].mxu0 }
 0x7fd   :  { %v860_v13 = vadd.f32 %v856_v25, %v3051_v54  ;;  %v2676_v26 = vpop.f32.mrb[7].mxu0 }
 0x85b   :  { %v948_v28 = vpop.xlane.xlu1 %947 }
 0x85c   :  { %2890 = vrcp.f32 %v948_v28 }
 0x85f   :  { %v1268_v32 = vpop.permute.xlu1 %1267 }
 0x866   :  { %v2891_v29 = vpop.eup %2890 }
 0x867   :  { %v950_v30 = vmul.f32 %v2891_v29, %v2889_v23 }
 0x869   :  { %2685 = vmatmul.mubr.msk.f32.vlgmr.msra.gmra.mrb[8].mxu0 %vm143_vm2, %v950_v30 }
 0x86a   :  { %2693 = vmatpush3.xpose.msk.msra.mxu0 %vm143_vm2, %v1104_v27  ;;  %2694 = vmatprep.mubr.msk.f32.mxu0 %vm2917_vm1, %v2916_v8 }
 0x86b   :  { %2702 = vmatprep.subr.mxu0 %v2916_v8 }
 0x86d   :  { %2695 = vmatmul.mubr.msk.f32.vlgmr.msra.gmra.mrb[10].mxu0 %vm143_vm2, %v2985_v11 }
 0x86e   :  { %2703 = vmatpush3.xpose.msk.msra.mxu0 %vm143_vm2, %v1270_v31  ;;  %2704 = vmatprep.mubr.msk.f32.mxu0 %vm2917_vm1, %v2916_v8  ;;  %v2522_v31 = vld [vmem:[%s3307_s2 + $0x1] ss:$0 sm:$0xff] }
 0x86f   :  { %2712 = vmatprep.subr.mxu0 %v2916_v8 }
 0x871   :  { %2705 = vmatmul.mubr.msk.f32.vlgmr.msra.gmra.mrb[12].mxu0 %vm143_vm2, %v1268_v32 }
 0x872   :  { %2713 = vmatpush3.msra.mxu0 %v3021_v35  ;;  %2714 = vmatprep.mubr.msk.f32.mxu0 %vm2917_vm1, %v2916_v8 }
 0x873   :  { %2722 = vmatprep.subr.mxu0 %v2916_v8 }
 0x93c   :  { %v1023_v34 = vpop.f32.mrb[8].mxu0 }
 0x93d   :  { %v2686_v36 = vpop.f32.mrb[9].mxu0  ;;  %2690 = vmatmul.mubr.msk.f32.vlgmr.msra.gmra.mrb[14].mxu1 %vm143_vm2, %v1023_v34 }
 0x93e   :  { %2699 = vmatprep.mubr.msk.f32.mxu1 %vm2917_vm1, %v2916_v8 }
 0x940   :  { %v1175_v35 = vpop.f32.mrb[10].mxu0 }
 0x941   :  { %v1179_v37 = vmul.f32 0.35355338, %v1175_v35  ;;  %v2696_v38 = vpop.f32.mrb[11].mxu0 }
 0x943   :  { %v1180_v39 = vsel %vm143_vm2, %v1179_v37, -inf }
 0x944   :  { %1181 = vmax.xlane.f32.xlu0 %v1180_v39  ;;  %v1341_v40 = vpop.f32.mrb[12].mxu0 }
 0x945   :  { %v1345_v41 = vmul.f32 0.35355338, %v1341_v40  ;;  %v2706_v42 = vpop.f32.mrb[13].mxu0 }
 0x947   :  { %v1346_v43 = vsel %vm143_vm2, %v1345_v41, -inf }
 0x948   :  { %1347 = vmax.xlane.f32.xlu1 %v1346_v43 }
 0x959   :  { %1191 = vrot.lane.b32.xlu1 %v2985_v11, %s2922_s29 }
 0x95d   :  { %1581 = vrot.lane.b32.xlu1 %v2985_v11, %s2923_s30 }
 0x961   :  { %1579 = vrot.lane.b32.xlu1 %v2985_v11, %s2924_s4 }
 0x9d1   :  { %v1182_v45 = vpop.xlane.xlu0 %1181 }
 0x9d2   :  { %v1183_v46 = vsub.f32 %v1179_v37, %v1182_v45 }
 0x9d4   :  { %v1184_v47 = vmul.f32 1.442695, %v1183_v46 }
 0x9d5   :  { %v1348_v48 = vpop.xlane.xlu1 %1347 }
 0x9d6   :  { %2892 = vpow2.f32 %v1184_v47  ;;  %v1349_v49 = vsub.f32 %v1345_v41, %v1348_v48 }
 0x9d8   :  { %v1350_v50 = vmul.f32 1.442695, %v1349_v49 }
 0x9d9   :  { %v1192_v51 = vpop.permute.xlu1 %1191 }
 0x9da   :  { %2894 = vpow2.f32 %v1350_v50  ;;  %2698 = vmatpush3.msra.mxu1 %v1192_v51 }
 0x9db   :  { %2707 = vmatprep.subr.mxu1 %v2916_v8 }
 0x9dd   :  { %v1582_v4 = vpop.permute.xlu1 %1581 }
 0x9e0   :  { %v2893_v52 = vpop.eup %2892 }
 0x9e1   :  { %v1186_v53 = vsel %vm143_vm2, %v2893_v52, 0.0 }
 0x9e2   :  { %1187 = vadd.xlane.f32.xlu0 %v1186_v53 }
 0x9e4   :  { %v2895_v54 = vpop.eup %2894 }
 0x9e5   :  { %v1352_v55 = vsel %vm143_vm2, %v2895_v54, 0.0 }
 0x9e6   :  { %1353 = vadd.xlane.f32.xlu0 %v1352_v55 }
 0x9fc   :  { %1357 = vrot.lane.b32.xlu0 %v2985_v11, %s2921_s28 }
 0xa10   :  { %v1097_v56 = vpop.f32.mrb[14].mxu1 }
 0xa11   :  { %v3131_v57 = vadd.f32 %v1097_v56, %v860_v13  ;;  %v2691_v58 = vpop.f32.mrb[15].mxu1 }
 0xa13   :  { %v2063_v36 = vadd.f32 %v2522_v31, %v3131_v57 }
 0xa15   :  { %v2065_v39 = vadd.f32 %v2063_v36, %v2965_v5 }
 0xa17   :  { %v2067_v40 = vsel %vm58_vm0, %v2065_v39, 0.0 }
 0xa6f   :  { %v1188_v59 = vpop.xlane.xlu0 %1187 }
 0xa70   :  { %2896 = vrcp.f32 %v1188_v59 }
 0xa73   :  { %v1354_v60 = vpop.xlane.xlu0 %1353 }
 0xa74   :  { %2898 = vrcp.f32 %v1354_v60 }
 0xa77   :  { %v1358_v63 = vpop.permute.xlu0 %1357 }
 0xa7a   :  { %v2897_v61 = vpop.eup %2896 }
 0xa7b   :  { %v1190_v62 = vmul.f32 %v2897_v61, %v2893_v52 }
 0xa7d   :  { %2700 = vmatmul.mubr.msk.f32.vlgmr.msra.gmra.mrb[16].mxu1 %vm143_vm2, %v1190_v62 }
 0xa7e   :  { %v2899_v0 = vpop.eup %2898  ;;  %2708 = vmatpush3.msra.mxu1 %v1358_v63  ;;  %2709 = vmatprep.mubr.msk.f32.mxu1 %vm2917_vm1, %v2916_v8 }
 0xa7f   :  { %v1356_v1 = vmul.f32 %v2899_v0, %v2895_v54  ;;  %2717 = vmatprep.subr.mxu1 %v2916_v8 }
 0xa81   :  { %2710 = vmatmul.mubr.msk.f32.vlgmr.msra.gmra.mrb[18].mxu1 %vm143_vm2, %v1356_v1 }
 0xa82   :  { %2718 = vmatpush3.msra.mxu1 %v3036_v44  ;;  %2719 = vmatprep.mubr.msk.f32.mxu1 %vm2917_vm1, %v2916_v8  ;;  %v1580_v44 = vpop.permute.xlu1 %1579 }
 0xa83   :  { %2727 = vmatprep.subr.mxu1 %v2916_v8 }
 0xb50   :  { %v1263_v2 = vpop.f32.mrb[16].mxu1 }
 0xb51   :  { %v2701_v3 = vpop.f32.mrb[17].mxu1  ;;  %2720 = vmatmul.mubr.msk.f32.vlgmr.msra.gmra.mrb[20].mxu1 %vm143_vm2, %v1263_v2 }
 0xb52   :  { %2729 = vmatprep.mubr.msk.f32.mxu1 %vm2917_vm1, %v2916_v8 }
 0xb54   :  { %v1429_v6 = vpop.f32.mrb[18].mxu1 }
 0xb55   :  { %v2711_v9 = vpop.f32.mrb[19].mxu1  ;;  %2715 = vmatmul.mubr.msk.f32.vlgmr.msra.gmra.mrb[14].mxu0 %vm143_vm2, %v1429_v6 }
 0xb56   :  { %2723 = vmatpush3.xpose.msk.msra.mxu0 %vm143_vm2, %v1582_v4  ;;  %2724 = vmatprep.mubr.msk.f32.mxu0 %vm2917_vm1, %v2916_v8 }
 0xb57   :  { %2732 = vmatprep.subr.mxu0 %v2916_v8 }
 0xb59   :  { %2725 = vmatmul.mubr.msk.f32.vlgmr.msra.gmra.mrb[16].mxu0 %vm143_vm2, %v1580_v44 }
 0xb5a   :  { %2733 = vmatpush3.msra.mxu0 %v3075_v10  ;;  %2734 = vmatprep.mubr.msk.f32.mxu0 %vm2917_vm1, %v2916_v8 }
 0xb5b   :  { %2742 = vmatprep.subr.mxu0 %v2916_v8 }
 0xc24   :  { %v1575_v12 = vpop.f32.mrb[20].mxu1 }
 0xc25   :  { %v2721_v14 = vpop.f32.mrb[21].mxu1 }
 0xc28   :  { %v1502_v15 = vpop.f32.mrb[14].mxu0 }
 0xc29   :  { %v1576_v16 = vadd.f32 %v1575_v12, %v1502_v15  ;;  %v2716_v17 = vpop.f32.mrb[15].mxu0 }
 0xc2c   :  { %v1653_v18 = vpop.f32.mrb[16].mxu0 }
 0xc2d   :  { %v1657_v19 = vmul.f32 0.35355338, %v1653_v18  ;;  %v2726_v20 = vpop.f32.mrb[17].mxu0 }
 0xc2e   :  { %v31_v20 = vld [vmem:[%s3305_s1 + $0x48] sm:$0xff] }
 0xc2f   :  { %v1658_v21 = vsel %vm143_vm2, %v1657_v19, -inf }
 0xc30   :  { %1659 = vmax.xlane.f32.xlu0 %v1658_v21 }
 0xc46   :  { %1669 = vrot.lane.b32.xlu0 %v2985_v11, %s2927_s11 }
 0xc4a   :  { %1819 = vrot.lane.b32.xlu0 %v2985_v11, %s2926_s10 }
 0xcbd   :  { %v1660_v10 = vpop.xlane.xlu0 %1659 }
 0xcbe   :  { %v1661_v22 = vsub.f32 %v1657_v19, %v1660_v10  ;;  %v30_v19 = vld [vmem:[%s3305_s1 + $0x40] sm:$0xff]  ;;  %v32_v10 = vld [vmem:[%s3305_s1 + $0x50] sm:$0xff] }
 0xcbf   :  { %v2820_v21 = vpack.c.bf16 %v31_v20, %v30_v19 }
 0xcc0   :  { %v1662_v23 = vmul.f32 1.442695, %v1661_v22  ;;  %v33_v22 = vld [vmem:[%s3305_s1 + $0x58] sm:$0xff] }
 0xcc1   :  { %v1670_v24 = vpop.permute.xlu0 %1669 }
 0xcc2   :  { %2900 = vpow2.f32 %v1662_v23  ;;  %2728 = vmatpush3.msra.mxu1 %v1670_v24  ;;  %v2824_v23 = vpack.c.bf16 %v33_v22, %v32_v10  ;;  %v34_v24 = vld [vmem:[%s3305_s1 + $0x60] sm:$0xff] }
 0xcc3   :  { %2737 = vmatprep.subr.mxu1 %v2916_v8 }
 0xcc5   :  { %v1820_v30 = vpop.permute.xlu0 %1819 }
 0xccc   :  { %v2901_v25 = vpop.eup %2900 }
 0xccd   :  { %v1664_v13 = vsel %vm143_vm2, %v2901_v25, 0.0 }
 0xcce   :  { %1665 = vadd.xlane.f32.xlu1 %v1664_v13  ;;  %v36_v13 = vld [vmem:[%s3305_s1 + $0x70] sm:$0xff] }
 0xcdf   :  { %1821 = vrot.lane.b32.xlu1 %v2985_v11, %s2925_s9 }
 0xd5b   :  { %v1666_v26 = vpop.xlane.xlu1 %1665 }
 0xd5c   :  { %2902 = vrcp.f32 %v1666_v26 }
 0xd5f   :  { %v1822_v29 = vpop.permute.xlu1 %1821 }
 0xd66   :  { %v2903_v27 = vpop.eup %2902 }
 0xd67   :  { %v1668_v28 = vmul.f32 %v2903_v27, %v2901_v25  ;;  %v35_v25 = vld [vmem:[%s3305_s1 + $0x68] sm:$0xff]  ;;  %v37_v27 = vld [vmem:[%s3305_s1 + $0x78] sm:$0xff] }
 0xd68   :  { %v2828_v26 = vpack.c.bf16 %v35_v25, %v34_v24  ;;  %v2532_v24 = vld [vmem:[%s3307_s2 + $0x7] ss:$0 sm:$0xff] }
 0xd69   :  { %2730 = vmatmul.mubr.msk.f32.vlgmr.msra.gmra.mrb[22].mxu1 %vm143_vm2, %v1668_v28  ;;  %v2832_v28 = vpack.c.bf16 %v37_v27, %v36_v13  ;;  %v46_v27 = vld [vmem:[%s3305_s1 + $0xc0] sm:$0xff] }
 0xd6a   :  { %2738 = vmatpush3.xpose.msk.msra.mxu1 %vm143_vm2, %v1822_v29  ;;  %2739 = vmatprep.mubr.msk.f32.mxu1 %vm2917_vm1, %v2916_v8  ;;  %v38_v29 = vld [vmem:[%s3305_s1 + $0x80] sm:$0xff] }
 0xd6b   :  { %2747 = vmatprep.subr.mxu1 %v2916_v8 }
 0xd6d   :  { %2740 = vmatmul.mubr.msk.f32.vlgmr.msra.gmra.mrb[24].mxu1 %vm143_vm2, %v1820_v30  ;;  %v39_v30 = vld [vmem:[%s3305_s1 + $0x88] sm:$0xff] }
 0xd6e   :  { %2748 = vmatpush3.msra.mxu1 %v3111_v33  ;;  %2749 = vmatprep.mubr.msk.f32.mxu1 %vm2917_vm1, %v2916_v8 }
 0xd6f   :  { %2829 = vmatprep.subr.bf16.mxu1 %v2828_v26 }
 0xe3c   :  { %v1741_v32 = vpop.f32.mrb[22].mxu1 }
 0xe3d   :  { %v2731_v34 = vpop.f32.mrb[23].mxu1  ;;  %2735 = vmatmul.mubr.msk.f32.vlgmr.msra.gmra.mrb[18].mxu0 %vm143_vm2, %v1741_v32 }
 0xe3e   :  { %2744 = vmatprep.mubr.msk.f32.mxu0 %vm2917_vm1, %v2916_v8 }
 0xe40   :  { %v1893_v35 = vpop.f32.mrb[24].mxu1 }
 0xe41   :  { %v1897_v37 = vmul.f32 0.35355338, %v1893_v35  ;;  %v2741_v38 = vpop.f32.mrb[25].mxu1 }
 0xe43   :  { %v1898_v33 = vsel %vm143_vm2, %v1897_v37, -inf }
 0xe44   :  { %1899 = vmax.xlane.f32.xlu1 %v1898_v33 }
 0xe48   :  { %2068 = vadd.xlane.f32.xlu1 %v2067_v40  ;;  %v41_v40 = vld [vmem:[%s3305_s1 + $0x98] sm:$0xff] }
 0xed1   :  { %v1900_v41 = vpop.xlane.xlu1 %1899 }
 0xed2   :  { %v1901_v42 = vsub.f32 %v1897_v37, %v1900_v41 }
 0xed4   :  { %v1902_v43 = vmul.f32 1.442695, %v1901_v42  ;;  %v2525_v42 = vld [vmem:[%s3307_s2 + $0x4] ss:$0 sm:$0xff] }
 0xed5   :  { %v2069_v55 = vpop.xlane.xlu1 %2068 }
 0xed6   :  { %2904 = vpow2.f32 %v1902_v43  ;;  %v2074_v56 = vmul.f32 0.03125, %v2069_v55 }
 0xed8   :  { %v2076_v59 = vsub.f32 %v2065_v39, %v2074_v56  ;;  %v40_v39 = vld [vmem:[%s3305_s1 + $0x90] sm:$0xff] }
 0xed9   :  { %v2840_v41 = vpack.c.bf16 %v41_v40, %v40_v39  ;;  %v52_v40 = vld [vmem:[%s3305_s1 + $0xf0] sm:$0xff] }
 0xeda   :  { %v2078_v63 = vmul.f32 %v2076_v59, %v2076_v59 }
 0xedc   :  { %v2080_v0 = vsel %vm58_vm0, %v2078_v63, 0.0 }
 0xee0   :  { %v2905_v45 = vpop.eup %2904 }
 0xee1   :  { %v1904_v46 = vsel %vm143_vm2, %v2905_v45, 0.0 }
 0xee2   :  { %1905 = vadd.xlane.f32.xlu0 %v1904_v46 }
 0xef8   :  { %1909 = vrot.lane.b32.xlu0 %v2985_v11, %s2928_s14 }
 0xf10   :  { %v1814_v47 = vpop.f32.mrb[18].mxu0 }
 0xf11   :  { %v1818_v48 = vadd.f32 %v1814_v47, %v1576_v16  ;;  %v2736_v49 = vpop.f32.mrb[19].mxu0  ;;  %v2524_v16 = vld [vmem:[%s3307_s2 + $0x3] ss:$0 sm:$0xff] }
 0xf6f   :  { %v1906_v50 = vpop.xlane.xlu0 %1905 }
 0xf70   :  { %2906 = vrcp.f32 %v1906_v50  ;;  %v2528_v50 = vld [vmem:[%s3307_s2 + $0x5] ss:$0 sm:$0xff] }
 0xf73   :  { %v1910_v5 = vpop.permute.xlu0 %1909 }
 0xf74   :  { %2743 = vmatpush3.msra.mxu0 %v1910_v5 }
 0xf75   :  { %2821 = vmatprep.subr.bf16.mxu0 %v2820_v21 }
 0xf7a   :  { %v2907_v51 = vpop.eup %2906 }
 0xf7b   :  { %v1908_v52 = vmul.f32 %v2907_v51, %v2905_v45 }
 0xf7d   :  { %2745 = vmatmul.mubr.msk.f32.vlgmr.msra.gmra.mrb[20].mxu0 %vm143_vm2, %v1908_v52 }
 0xf7e   :  { %2823 = vmatpush3.bf16.msra.mxu0 %v2820_v21  ;;  %v2531_v21 = vld [vmem:[%s3307_s2 + $0x6] ss:$0 sm:$0xff] }
 0xf7f   :  { %2825 = vmatprep.subr.bf16.mxu0 %v2824_v23 }
 0xf82   :  { %2827 = vmatpush3.bf16.msra.mxu0 %v2824_v23 }
0x1050   :  { %v1981_v53 = vpop.f32.mrb[20].mxu0 }
0x1051   :  { %v2746_v54 = vpop.f32.mrb[21].mxu0  ;;  %2750 = vmatmul.mubr.msk.f32.vlgmr.msra.gmra.mrb[26].mxu1 %vm143_vm2, %v1981_v53 }
0x1052   :  { %2831 = vmatpush3.bf16.msra.mxu1 %v2828_v26 }
0x1053   :  { %2833 = vmatprep.subr.bf16.mxu1 %v2832_v28 }
0x1056   :  { %2835 = vmatpush3.bf16.msra.mxu1 %v2832_v28  ;;  %v47_v28 = vld [vmem:[%s3305_s1 + $0xc8] sm:$0xff] }
0x1124   :  { %v2054_v57 = vpop.f32.mrb[26].mxu1 }
0x1125   :  { %v2058_v58 = vadd.f32 %v2054_v57, %v1818_v48  ;;  %v2751_v11 = vpop.f32.mrb[27].mxu1 }
0x1127   :  { %v2064_v60 = vadd.f32 %v2522_v31, %v2058_v58  ;;  %v2836_v31 = vpack.c.bf16 %v39_v30, %v38_v29 }
0x1129   :  { %v2066_v61 = vadd.f32 %v2064_v60, %v2972_v7  ;;  %v2523_v7 = vld [vmem:[%s3307_s2 + $0x2] ss:$0 sm:$0xff]  ;;  %2837 = vmatprep.subr.bf16.mxu1 %v2836_v31 }
0x112a   :  { %2839 = vmatpush3.bf16.msra.mxu1 %v2836_v31 }
0x112b   :  { %v2070_v62 = vsel %vm58_vm0, %v2066_v61, 0.0  ;;  %2841 = vmatprep.subr.bf16.mxu1 %v2840_v41 }
0x112c   :  { %2071 = vadd.xlane.f32.xlu1 %v2070_v62 }
0x112e   :  { %2843 = vmatpush3.bf16.msra.mxu1 %v2840_v41 }
0x1130   :  { %2081 = vadd.xlane.f32.xlu1 %v2080_v0 }
0x11b9   :  { %v2072_v1 = vpop.xlane.xlu1 %2071 }
0x11ba   :  { %v2075_v2 = vmul.f32 0.03125, %v2072_v1 }
0x11bc   :  { %v2077_v3 = vsub.f32 %v2066_v61, %v2075_v2 }
0x11bd   :  { %v2082_v4 = vpop.xlane.xlu1 %2081 }
0x11be   :  { %v2086_v6 = vmul.f32 0.03125, %v2082_v4  ;;  %v2079_v9 = vmul.f32 %v2077_v3, %v2077_v3  ;;  %v43_v4 = vld [vmem:[%s3305_s1 + $0xa8] sm:$0xff] }
0x11c0   :  { %v2088_v44 = vadd.f32 1e-05, %v2086_v6  ;;  %v2083_v12 = vsel %vm58_vm0, %v2079_v9, 0.0  ;;  %v44_v6 = vld [vmem:[%s3305_s1 + $0xb0] sm:$0xff]  ;;  %v2929_v9 = vmov 0.0|0.0  }
0x11c1   :  { %2084 = vadd.xlane.f32.xlu1 %v2083_v12  ;;  %2844 = vmatprep.subr.bf16.mxu0 %v2929_v9  ;;  %v45_v12 = vld [vmem:[%s3305_s1 + $0xb8] sm:$0xff] }
0x11c2   :  { %2908 = vrsqrt.f32 %v2088_v44 }
0x11cc   :  { %v2909_v14 = vpop.eup %2908 }
0x11cd   :  { %v2092_v15 = vmul.f32 %v2909_v14, %v2076_v59  ;;  %v2848_v14 = vpack.c.bf16 %v45_v12, %v44_v6 }
0x11cf   :  { %v2098_v17 = vmul.f32 %v2523_v7, %v2092_v15 }
0x11d1   :  { %v2104_v18 = vadd.f32 %v2524_v16, %v2098_v17 }
0x11d3   :  { %2760 = vmatprep.mubr.msk.f32.mxu0 %vm58_vm0, %v2104_v18 }
0x124e   :  { %v2085_v32 = vpop.xlane.xlu1 %2084 }
0x124f   :  { %v2087_v34 = vmul.f32 0.03125, %v2085_v32  ;;  %v2851_v32 = vpack.c.bf16 %v47_v28, %v46_v27 }
0x1251   :  { %v2089_v36 = vadd.f32 1e-05, %v2087_v34  ;;  %v48_v34 = vld [vmem:[%s3305_s1 + $0xd0] sm:$0xff] }
0x1253   :  { %2910 = vrsqrt.f32 %v2089_v36  ;;  %v49_v36 = vld [vmem:[%s3305_s1 + $0xd8] sm:$0xff] }
0x125d   :  { %v2911_v35 = vpop.eup %2910 }
0x125e   :  { %v2093_v37 = vmul.f32 %v2911_v35, %v2077_v3  ;;  %v42_v3 = vld [vmem:[%s3305_s1 + $0xa0] sm:$0xff] }
0x125f   :  { %v2845_v44 = vpack.c.bf16 %v43_v4, %v42_v3 }
0x1260   :  { %v2099_v38 = vmul.f32 %v2523_v7, %v2093_v37  ;;  %v2854_v37 = vpack.c.bf16 %v49_v36, %v48_v34 }
0x1262   :  { %v2105_v33 = vadd.f32 %v2524_v16, %v2099_v38  ;;  %v50_v38 = vld [vmem:[%s3305_s1 + $0xe0] sm:$0xff] }
0x1264   :  { %2761 = vmatmul.mubr.msk.f32.vlgmr.msra.gmra.mrb[22].mxu0 %vm58_vm0, %v2105_v33 }
0x1265   :  { %2790 = vmatprep.mubr.msk.f32.mxu0 %vm2917_vm1, %v2916_v8  ;;  %2846 = vmatpush3.bf16.msra.mxu0 %v2845_v44 }
0x1266   :  { %2847 = vmatprep.subr.bf16.mxu0 %v2929_v9 }
0x1269   :  { %2849 = vmatpush3.bf16.msra.mxu0 %v2848_v14 }
0x126a   :  { %2850 = vmatprep.subr.bf16.mxu0 %v2929_v9 }
0x1337   :  { %v2762_v43 = vpop.f32.mrb[22].mxu0 }
0x1338   :  { %v2188_v45 = vadd.f32 %v2762_v43, %v2525_v42  ;;  %v2182_v46 = vpop.f32.mrb[23].mxu0 }
0x1339   :  { %v2183_v47 = vadd.f32 %v2525_v42, %v2182_v46  ;;  %v2533_v42 = vld [vmem:[%s3307_s2 + $0x8] ss:$0 sm:$0xff] }
0x133a   :  { %v2192_v49 = vmax.f32 %v2188_v45, 0.0 }
0x133b   :  { %v2191_v48 = vmax.f32 %v2183_v47, 0.0 }
0x133d   :  { %2779 = vmatprep.mubr.msk.f32.mxu1 %vm2197_vm3, %v2191_v48  ;;  %v2535_v48 = vld [vmem:[%s3307_s2 + $0x9] ss:$0 sm:$0xff] }
0x133e   :  { %2780 = vmatmul.mubr.msk.f32.vlgmr.msra.gmra.mrb[28].mxu1 %vm2197_vm3, %v2192_v49 }
0x1411   :  { %v2781_v5 = vpop.f32.mrb[28].mxu1 }
0x1412   :  { %v2270_v51 = vpop.f32.mrb[29].mxu1  ;;  %v2276_v52 = vadd.f32 %v2781_v5, %v2528_v50 }
0x1413   :  { %v2271_v53 = vadd.f32 %v2528_v50, %v2270_v51 }
0x1414   :  { %v2280_v56 = vadd.f32 %v2276_v52, %v2105_v33  ;;  %v51_v33 = vld [vmem:[%s3305_s1 + $0xe8] sm:$0xff] }
0x1415   :  { %v2279_v54 = vadd.f32 %v2271_v53, %v2104_v18  ;;  %v2857_v39 = vpack.c.bf16 %v51_v33, %v50_v38 }
0x1416   :  { %v2284_v57 = vsel %vm58_vm0, %v2280_v56, 0.0 }
0x1417   :  { %v2281_v55 = vsel %vm58_vm0, %v2279_v54, 0.0 }
0x1418   :  { %2282 = vadd.xlane.f32.xlu1 %v2281_v55 }
0x141c   :  { %2285 = vadd.xlane.f32.xlu1 %v2284_v57 }
0x14a5   :  { %v2283_v58 = vpop.xlane.xlu1 %2282 }
0x14a6   :  { %v2287_v11 = vmul.f32 0.03125, %v2283_v58 }
0x14a8   :  { %v2289_v59 = vsub.f32 %v2279_v54, %v2287_v11 }
0x14a9   :  { %v2286_v60 = vpop.xlane.xlu1 %2285 }
0x14aa   :  { %v2288_v61 = vmul.f32 0.03125, %v2286_v60  ;;  %v2291_v62 = vmul.f32 %v2289_v59, %v2289_v59 }
0x14ac   :  { %v2290_v63 = vsub.f32 %v2280_v56, %v2288_v61  ;;  %v2293_v0 = vsel %vm58_vm0, %v2291_v62, 0.0 }
0x14ad   :  { %2294 = vadd.xlane.f32.xlu0 %v2293_v0 }
0x14ae   :  { %v2292_v1 = vmul.f32 %v2290_v63, %v2290_v63 }
0x14b0   :  { %v2296_v2 = vsel %vm58_vm0, %v2292_v1, 0.0 }
0x14b1   :  { %2297 = vadd.xlane.f32.xlu1 %v2296_v2 }
0x153a   :  { %v2295_v7 = vpop.xlane.xlu0 %2294 }
0x153b   :  { %v2299_v15 = vmul.f32 0.03125, %v2295_v7 }
0x153d   :  { %v2301_v16 = vadd.f32 1e-05, %v2299_v15 }
0x153e   :  { %v2298_v17 = vpop.xlane.xlu1 %2297 }
0x153f   :  { %2912 = vrsqrt.f32 %v2301_v16  ;;  %v2300_v18 = vmul.f32 0.03125, %v2298_v17 }
0x1541   :  { %v2302_v19 = vadd.f32 1e-05, %v2300_v18 }
0x1543   :  { %2914 = vrsqrt.f32 %v2302_v19 }
0x1549   :  { %v2913_v20 = vpop.eup %2912 }
0x154a   :  { %v2305_v10 = vmul.f32 %v2913_v20, %v2289_v59 }
0x154c   :  { %v2311_v22 = vmul.f32 %v2531_v21, %v2305_v10 }
0x154d   :  { %v2915_v23 = vpop.eup %2914 }
0x154e   :  { %v2306_v25 = vmul.f32 %v2915_v23, %v2290_v63  ;;  %v2317_v26 = vadd.f32 %v2532_v24, %v2311_v22 }
0x1550   :  { %v2312_v13 = vmul.f32 %v2531_v21, %v2306_v25  ;;  %v2320_v30 = vrot.slane %v2317_v26, 7 }
0x1552   :  { %v2318_v29 = vadd.f32 %v2532_v24, %v2312_v13 }
0x1554   :  { %v2323_v31 = vrot.slane %v2318_v29, 6 }
0x1556   :  { %v2326_v35 = vsel %vm2325_vm4, %v2320_v30, %v2323_v31 }
0x1557   :  { %2791 = vmatmul.mubr.msk.f32.vlgmr.msra.gmra.mrb[24].mxu0 %vm58_vm0, %v2326_v35 }
0x1558   :  { %2852 = vmatpush3.bf16.msra.mxu0 %v2851_v32  ;;  %2809 = vmatprep.mubr.msk.f32.mxu0 %vm2917_vm1, %v2916_v8  ;;  %v53_v8 = vld [vmem:[%s3305_s1 + $0xf8] sm:$0xff] }
0x1559   :  { %2853 = vmatprep.subr.bf16.mxu0 %v2929_v9  ;;  %v2860_v41 = vpack.c.bf16 %v53_v8, %v52_v40 }
0x155c   :  { %2855 = vmatpush3.bf16.msra.mxu0 %v2854_v37 }
0x155d   :  { %2856 = vmatprep.subr.bf16.mxu0 %v2929_v9 }
0x1560   :  { %2858 = vmatpush3.bf16.msra.mxu0 %v2857_v39 }
0x1561   :  { %2859 = vmatprep.subr.bf16.mxu0 %v2929_v9 }
0x1564   :  { %2861 = vmatpush3.bf16.msra.mxu0 %v2860_v41 }
0x162a   :  { %v2400_v43 = vpop.f32.mrb[24].mxu0 }
0x162b   :  { %v2401_v45 = vadd.f32 %v2533_v42, %v2400_v43  ;;  %v2792_v46 = vpop.f32.mrb[25].mxu0 }
0x162d   :  { %v2404_v47 = vmax.f32 %v2401_v45, 0.0 }
0x162f   :  { %2810 = vmatmul.mubr.msk.f32.vlgmr.msra.gmra.mrb[26].mxu0 %vm2197_vm3, %v2404_v47 }
0x1702   :  { %v2478_v49 = vpop.f32.mrb[26].mxu0 }
0x1703   :  { %v2479_v50 = vadd.f32 %v2535_v48, %v2478_v49  ;;  %v2811_v5 = vpop.f32.mrb[27].mxu0 }
0x1705   :  { %2482 = vst [vmem:[%s3308_s3] sm:$0x3] %v2479_v50 }

</bundles_post_ra>
